<compile_context>
chip_gen: v7x
topology: tpu7x:2x2x1
jax: 0.10.0
libtpu: 0.0.40
codegen_flags: <defaults>
</compile_context>

<pallas_src>
import functools

import jax
import jax.numpy as jnp
from jax.experimental import pallas as pl
from jax.experimental.pallas import tpu as pltpu


def _round_up(x, m):
    return (x + m - 1) // m * m


def _pick_row_tile(R, tile_rows):
    """Large row tiles for pipelining, but >=2 grid steps when possible so the
    'parallel' grid axis can be sharded across both v7x TensorCores."""
    tr = min(tile_rows, _round_up(R, 8))
    if _round_up(R, tr) // tr < 2 and R > 8:
        tr = _round_up((R + 1) // 2, 8)
    return tr


# --------------------------------------------------------------------------
# Pallas kernels
# --------------------------------------------------------------------------

def _matmul_kernel(x_ref, w_ref, o_ref):
    # x: (TR, K) bf16   w: (K, N) bf16   o: (TR, N)
    o_ref[...] = jnp.dot(x_ref[...], w_ref[...],
                         preferred_element_type=jnp.float32).astype(o_ref.dtype)


def _matmul_bias_kernel(x_ref, w_ref, b_ref, o_ref):
    # x: (TR, K) bf16   w: (K, N) bf16   b: (1, N) f32   o: (TR, N)
    y = jnp.dot(x_ref[...], w_ref[...], preferred_element_type=jnp.float32)
    o_ref[...] = (y + b_ref[...]).astype(o_ref.dtype)


def _ce_kernel(logits_ref, yt_ref, w_ref, num_ref, den_ref, *, ignore_index):
    # class-on-sublane / pixel-on-lane layout:
    #   logits: (1, C, T) f32    yt: (1, 1, T) int32    w: (1, C, 1) f32
    # num/den: resident (1, 1) accumulators across the whole (N, HW-tiles) grid.
    @pl.when(pl.program_id(0) + pl.program_id(1) == 0)
    def _():
        num_ref[...] = jnp.zeros_like(num_ref)
        den_ref[...] = jnp.zeros_like(den_ref)

    x = logits_ref[...].astype(jnp.float32)
    yt = yt_ref[...]
    m = jnp.max(x, axis=1, keepdims=True)
    lse = m + jnp.log(jnp.sum(jnp.exp(x - m), axis=1, keepdims=True))
    cls = jax.lax.broadcasted_iota(jnp.int32, x.shape, 1)
    onehot = (cls == yt).astype(jnp.float32)                  # (1, C, T)
    tgt = jnp.sum(x * onehot, axis=1, keepdims=True)          # (1, 1, T)
    wr = jnp.sum(w_ref[...] * onehot, axis=1, keepdims=True)  # per-pixel class weight
    wr = jnp.where(yt != ignore_index, wr, 0.0)
    nll = lse - tgt
    num_ref[...] += jnp.sum(wr * nll).reshape(1, 1)
    den_ref[...] += jnp.sum(wr).reshape(1, 1)


# --------------------------------------------------------------------------
# Tiled pallas_call wrappers
# --------------------------------------------------------------------------

_MM_PARAMS = pltpu.CompilerParams(
    dimension_semantics=("parallel",),      # row tiles independent; v7x: 2 TCs
    vmem_limit_bytes=32 * 1024 * 1024,      # well under v7x's 64 MiB physical VMEM
)


def matmul_rows(x, w, *, tile_rows=1024, out_dtype=jnp.float32):
    """(R, K) @ (K, N) -> (R, N). bf16 operands, f32 accumulation, row-tiled."""
    R, K = x.shape
    n_out = w.shape[1]
    x = x.astype(jnp.bfloat16)
    w = w.astype(jnp.bfloat16)
    tr = _pick_row_tile(R, tile_rows)
    rp = _round_up(R, tr)
    if rp != R:
        x = jnp.pad(x, ((0, rp - R), (0, 0)))
    out = pl.pallas_call(
        _matmul_kernel,
        out_shape=jax.ShapeDtypeStruct((rp, n_out), out_dtype),
        grid=(rp // tr,),
        in_specs=[
            pl.BlockSpec((tr, K), lambda i: (i, 0)),
            pl.BlockSpec((K, n_out), lambda i: (0, 0)),
        ],
        out_specs=pl.BlockSpec((tr, n_out), lambda i: (i, 0)),
        compiler_params=_MM_PARAMS,
    )(x, w)
    return out[:R] if rp != R else out


def matmul_bias_rows(x, w, b, *, tile_rows=1024, out_dtype=jnp.float32):
    """(R, K) @ (K, N) + b -> (R, N). bf16 operands, f32 accumulation, row-tiled."""
    R, K = x.shape
    n_out = w.shape[1]
    x = x.astype(jnp.bfloat16)
    w = w.astype(jnp.bfloat16)
    tr = _pick_row_tile(R, tile_rows)
    rp = _round_up(R, tr)
    if rp != R:
        x = jnp.pad(x, ((0, rp - R), (0, 0)))
    out = pl.pallas_call(
        _matmul_bias_kernel,
        out_shape=jax.ShapeDtypeStruct((rp, n_out), out_dtype),
        grid=(rp // tr,),
        in_specs=[
            pl.BlockSpec((tr, K), lambda i: (i, 0)),
            pl.BlockSpec((K, n_out), lambda i: (0, 0)),
            pl.BlockSpec((1, n_out), lambda i: (0, 0)),
        ],
        out_specs=pl.BlockSpec((tr, n_out), lambda i: (i, 0)),
        compiler_params=_MM_PARAMS,
    )(x, w, b.reshape(1, n_out).astype(jnp.float32))
    return out[:R] if rp != R else out


# --------------------------------------------------------------------------
# FCN building blocks
# --------------------------------------------------------------------------

def conv1x1(x_nhwc, w_oi, b):
    """nn.Conv2d(Cin, Cout, 1) in NHWC.  w_oi: (Cout, Cin), b: (Cout,)."""
    N, H, W, Cin = x_nhwc.shape
    Cout = w_oi.shape[0]
    out = matmul_bias_rows(
        x_nhwc.reshape(N * H * W, Cin),
        jnp.transpose(w_oi),
        b,
        out_dtype=jnp.bfloat16)
    return out.reshape(N, H, W, Cout)


def fused_score_upsample(f_nhwc, w_score, b_score, w_tconv, stride,
                         residual=None, out_dtype=jnp.float32, out_layout="nhwc"):
    """ConvTranspose2d(score(f) + residual), all fused into one Pallas matmul.

    score = nn.Conv2d(Cin, C, 1) with weight w_score (C, Cin) and bias b_score (C,).
    upsample = nn.ConvTranspose2d(C, C, k, stride=s, bias=False), w_tconv (C, C, k, k),
    requires k == 2*s (true for FCN: (4,2) and (16,8)).
    """
    N, H, W, Cin = f_nhwc.shape
    C = w_score.shape[0]
    s = stride
    k = w_tconv.shape[2]
    assert k == 2 * s, "fused_score_upsample requires kernel == 2*stride"
    Hq, Wq = H + 1, W + 1
    P = s * s
    R = N * Hq * Wq

    # input: [f, ones (bias channel), residual] — padded by one pixel, 4 shifted taps
    parts = [f_nhwc.astype(jnp.bfloat16), jnp.ones((N, H, W, 1), jnp.bfloat16)]
    if residual is not None:
        parts.append(residual.astype(jnp.bfloat16))
    v = jnp.concatenate(parts, axis=-1)
    Ka = v.shape[-1]                                   # Cin + 1 (+ C)
    vpad = jnp.pad(v, ((0, 0), (1, 1), (1, 1), (0, 0)))
    taps = [vpad[:, 1 - jh:1 - jh + Hq, 1 - jw:1 - jw + Wq, :]
            for jh in (0, 1) for jw in (0, 1)]
    x_taps = jnp.concatenate(taps, axis=-1).reshape(R, 4 * Ka)   # bf16

    # per-(phase p, tap t) matrices M[p,t][ci,co] = W[ci, co, jh*s+rh, jw*s+rw]
    wm = jnp.transpose(w_tconv, (2, 3, 0, 1)).astype(jnp.float32)   # (kH, kW, Ci, Co)
    wm = wm.reshape(2, s, 2, s, C, C)                               # (jh, rh, jw, rw, ., .)
    wm = jnp.transpose(wm, (1, 3, 0, 2, 4, 5)).reshape(P, 4, C, C)  # (p, t, ci, co)

    # pre-compose score conv (+bias via ones channel) with the per-tap matrices (in f32)
    A = jnp.concatenate([jnp.transpose(w_score).astype(jnp.float32),
                         b_score[None, :].astype(jnp.float32)], axis=0)   # (Cin+1, C)
    w_full = jnp.einsum('kc,ptcd->ptkd', A, wm)                           # (P, 4, Cin+1, C)
    if residual is not None:
        w_full = jnp.concatenate([w_full, wm], axis=2)                    # (P, 4, Ka, C)
    w_full = jnp.transpose(w_full, (1, 2, 0, 3)).reshape(4 * Ka, P * C)

    # Lane-dense output: pad column count to a multiple of 128 (unmasked stores).
    PC = P * C
    n_pad = _round_up(PC, 128)
    if n_pad != PC:
        w_full = jnp.pad(w_full, ((0, 0), (0, n_pad - PC)))

    y = matmul_rows(x_taps, w_full, out_dtype=out_dtype)                  # (R, n_pad)
    if n_pad != PC:
        y = y[:, :PC]

    # depth-to-space: out[n, s*qh+rh, s*qw+rw, c] = y[(n,qh,qw), (rh*s+rw)*C + c]
    y = y.reshape(N, Hq, Wq, s, s, C)
    if out_layout == "nhwc":
        return jnp.transpose(y, (0, 1, 3, 2, 4, 5)).reshape(N, s * Hq, s * Wq, C)
    # NCHW emitted directly (fuses depth-to-space with the final-layout transpose)
    return jnp.transpose(y, (0, 5, 1, 3, 2, 4)).reshape(N, C, s * Hq, s * Wq)


def cross_entropy_loss(yp_nchw, yt, weight, ignore_index, *, tile_hw=2048):
    """F.cross_entropy(yp, yt, weight=weight, ignore_index=ignore_index), mean.

    Class-on-sublane / pixel-on-lane layout: reads the NCHW logits directly
    (free reshape), no full-resolution transpose inside the loss.
    """
    N, C, H, W = yp_nchw.shape
    HW = H * W
    logits = yp_nchw.reshape(N, C, HW)
    targets = yt.reshape(N, 1, HW).astype(jnp.int32)
    thw = min(tile_hw, _round_up(HW, 128))
    hwp = _round_up(HW, thw)
    if hwp != HW:
        logits = jnp.pad(logits, ((0, 0), (0, 0), (0, hwp - HW)))
        targets = jnp.pad(targets, ((0, 0), (0, 0), (0, hwp - HW)),
                          constant_values=ignore_index)
    wvec = weight.reshape(1, C, 1).astype(jnp.float32)
    num, den = pl.pallas_call(
        functools.partial(_ce_kernel, ignore_index=ignore_index),
        out_shape=(jax.ShapeDtypeStruct((1, 1), jnp.float32),
                   jax.ShapeDtypeStruct((1, 1), jnp.float32)),
        grid=(N, hwp // thw),
        in_specs=[
            pl.BlockSpec((1, C, thw), lambda n, i: (n, 0, i)),
            pl.BlockSpec((1, 1, thw), lambda n, i: (n, 0, i)),
            pl.BlockSpec((1, C, 1), lambda n, i: (0, 0, 0)),
        ],
        out_specs=(pl.BlockSpec((1, 1), lambda n, i: (0, 0)),
                   pl.BlockSpec((1, 1), lambda n, i: (0, 0))),
        compiler_params=pltpu.CompilerParams(
            dimension_semantics=("arbitrary", "arbitrary"),
            vmem_limit_bytes=32 * 1024 * 1024,
        ),
    )(logits, targets, wvec)
    num, den = num[0, 0], den[0, 0]
    # Guard: if every pixel is ignore_index PyTorch yields 0/0 (NaN); we return 0.
    return jnp.where(den > 0, num / den, jnp.zeros_like(num))


# --------------------------------------------------------------------------
# FCN forward
# --------------------------------------------------------------------------

def fcn_forward(params, x_nchw, yt, weight, ignore_index):
    # ---- encoder stand-in (see TODO at top): features at /8, /16, /32 ----
    x = jnp.transpose(x_nchw, (0, 2, 3, 1)).astype(jnp.float32)   # NHWC
    N, S, _, Ci = x.shape
    p8 = x.reshape(N, S // 8, 8, S // 8, 8, Ci).mean(axis=(2, 4))
    p16 = p8.reshape(N, S // 16, 2, S // 16, 2, Ci).mean(axis=(2, 4))
    p32 = p16.reshape(N, S // 32, 2, S // 32, 2, Ci).mean(axis=(2, 4))
    f8 = conv1x1(p8, *params["encoder"][0])       # y[-3]
    f16 = conv1x1(p16, *params["encoder"][1])     # y[-2]
    f32f = conv1x1(p32, *params["encoder"][2])    # y[-1]

    # ---- FCN head (exact PyTorch semantics, score+residual+convT fused per stage) ----
    y0 = fused_score_upsample(f32f, *params["score32"], params["upsample32"],
                              stride=2, out_dtype=jnp.bfloat16)
    y1 = fused_score_upsample(f16, *params["score16"], params["upsample16"],
                              stride=2, residual=y0[:, 1:-1, 1:-1, :],   # [:, :, 1:-1, 1:-1] NCHW
                              out_dtype=jnp.bfloat16)
    y2 = fused_score_upsample(f8, *params["score8"], params["upsample8"],
                              stride=8, residual=y1[:, 1:-1, 1:-1, :],
                              out_dtype=jnp.float32, out_layout="nchw")
    yp_nchw = y2[:, :, 4:-4, 4:-4]                                       # [:, :, 4:-4, 4:-4]

    loss = cross_entropy_loss(yp_nchw, yt, weight, ignore_index)
    return yp_nchw, loss


# --------------------------------------------------------------------------
# Deterministic parameter initialization
# --------------------------------------------------------------------------

def init_params(key, num_classes, in_ch, c8, c16, c32):
    keys = jax.random.split(key, 12)

    def conv_w(k, cout, cin):
        return jax.random.normal(k, (cout, cin), jnp.float32) * 0.1

    def tconv_w(k, c, ks):
        return jax.random.normal(k, (c, c, ks, ks), jnp.float32) * 0.1

    return {
        "encoder": [
            (conv_w(keys[0], c8, in_ch), jnp.zeros((c8,), jnp.float32)),
            (conv_w(keys[1], c16, in_ch), jnp.zeros((c16,), jnp.float32)),
            (conv_w(keys[2], c32, in_ch), jnp.zeros((c32,), jnp.float32)),
        ],
        "score32": (conv_w(keys[3], num_classes, c32),
                    jax.random.normal(keys[4], (num_classes,), jnp.float32) * 0.01),
        "score16": (conv_w(keys[5], num_classes, c16),
                    jax.random.normal(keys[6], (num_classes,), jnp.float32) * 0.01),
        "score8": (conv_w(keys[7], num_classes, c8),
                   jax.random.normal(keys[8], (num_classes,), jnp.float32) * 0.01),
        "upsample32": tconv_w(keys[9], num_classes, 4),
        "upsample16": tconv_w(keys[10], num_classes, 4),
        "upsample8": tconv_w(keys[11], num_classes, 16),
    }


if __name__ == "__main__":
    key = jax.random.PRNGKey(0)
    k_x, k_y, k_p = jax.random.split(key, 3)

    N, S, num_classes = 2, 64, 4          # square input, divisible by 32 (downsampling=5)
    ignore_index = -1
    c8, c16, c32 = 16, 32, 64             # encoder.num_features[-3:], small

    x = jax.random.normal(k_x, (N, 3, S, S), jnp.float32)
    yt = jax.random.randint(k_y, (N, S, S), 0, num_classes, dtype=jnp.int32)
    yt = yt.at[:, :4, :4].set(ignore_index)                 # some ignored pixels
    weight = jnp.array([1.0, 2.0, 0.5, 1.5], jnp.float32)   # per-class CE weights

    params = init_params(k_p, num_classes, 3, c8, c16, c32)

    fwd = jax.jit(fcn_forward, static_argnums=(4,))
    yp, loss = fwd(params, x, yt, weight, ignore_index)
    jax.block_until_ready((yp, loss))

    assert yp.shape == (N, num_classes, S, S)
    assert loss.shape == ()
    assert bool(jnp.isfinite(loss))
    print("KERNEL_OK")
</pallas_src>

<mosaic_0001>
module attributes {stable_mosaic.version = 11 : i64} {
  func.func @_matmul_bias_kernel(%arg0: i32, %arg1: memref<8x3xbf16, #tpu.memory_space<vmem>>, %arg2: memref<3x64xbf16, #tpu.memory_space<vmem>>, %arg3: memref<1x64xf32, #tpu.memory_space<vmem>>, %arg4: memref<8x64xbf16, #tpu.memory_space<vmem>>) attributes {dimension_semantics = [#tpu.dimension_semantics<parallel>], iteration_bounds = array<i64: 1>, scalar_prefetch = 0 : i64, scratch_operands = 0 : i64, tpu.core_type = #tpu.core_type<tc>, window_params = [{transform_indices = @transform_0, window_bounds = array<i64: 8, 3>}, {pipeline_mode = #tpu.pipeline_mode<synchronous>, transform_indices = @transform_1, window_bounds = array<i64: 3, 64>}, {pipeline_mode = #tpu.pipeline_mode<synchronous>, transform_indices = @transform_2, window_bounds = array<i64: 1, 64>}, {transform_indices = @transform_3, window_bounds = array<i64: 8, 64>}]} {
    %c0 = arith.constant 0 : index
    %c0_0 = arith.constant 0 : index
    %0 = vector.load %arg1[%c0, %c0_0] : memref<8x3xbf16, #tpu.memory_space<vmem>>, vector<8x3xbf16>
    %c0_1 = arith.constant 0 : index
    %c0_2 = arith.constant 0 : index
    %1 = vector.load %arg2[%c0_1, %c0_2] : memref<3x64xbf16, #tpu.memory_space<vmem>>, vector<3x64xbf16>
    %cst = arith.constant dense<0.000000e+00> : vector<8x64xf32>
    %2 = tpu.matmul %0, %1, %cst {dimension_numbers = #tpu.dot_dimension_numbers<[1], [0], [0], [1], [0, 0, 1, 1], [], []>} : vector<8x3xbf16>, vector<3x64xbf16>, vector<8x64xf32> -> vector<8x64xf32>
    %c0_3 = arith.constant 0 : index
    %c0_4 = arith.constant 0 : index
    %3 = vector.load %arg3[%c0_3, %c0_4] : memref<1x64xf32, #tpu.memory_space<vmem>>, vector<1x64xf32>
    %4 = vector.broadcast %3 : vector<1x64xf32> to vector<8x64xf32>
    %5 = arith.addf %2, %4 : vector<8x64xf32>
    %6 = arith.truncf %5 : vector<8x64xf32> to vector<8x64xbf16>
    %c0_5 = arith.constant 0 : index
    %c0_6 = arith.constant 0 : index
    %7 = vector.load %arg4[%c0_5, %c0_6] : memref<8x64xbf16, #tpu.memory_space<vmem>>, vector<8x64xbf16>
    tpu.vector_store %arg4[%c0_5, %c0_6], %6 {strides = array<i32>} : memref<8x64xbf16, #tpu.memory_space<vmem>>, vector<8x64xbf16>,
    return
  }
  func.func @transform_0(%arg0: i32) -> (i32, i32) {
    %c0_i32 = arith.constant 0 : i32
    %c0_i32_0 = arith.constant 0 : i32
    return %arg0, %c0_i32 : i32, i32
  }
  func.func @transform_1(%arg0: i32) -> (i32, i32) {
    %c0_i32 = arith.constant 0 : i32
    %c0_i32_0 = arith.constant 0 : i32
    %c0_i32_1 = arith.constant 0 : i32
    return %c0_i32, %c0_i32_0 : i32, i32
  }
  func.func @transform_2(%arg0: i32) -> (i32, i32) {
    %c0_i32 = arith.constant 0 : i32
    %c0_i32_0 = arith.constant 0 : i32
    %c0_i32_1 = arith.constant 0 : i32
    return %c0_i32, %c0_i32_0 : i32, i32
  }
  func.func @transform_3(%arg0: i32) -> (i32, i32) {
    %c0_i32 = arith.constant 0 : i32
    %c0_i32_0 = arith.constant 0 : i32
    return %arg0, %c0_i32 : i32, i32
  }
}

module attributes {stable_mosaic.version = 11 : i64} {
  func.func @_matmul_kernel(%arg0: i32, %arg1: memref<16x260xbf16, #tpu.memory_space<vmem>>, %arg2: memref<260x128xbf16, #tpu.memory_space<vmem>>, %arg3: memref<16x128xbf16, #tpu.memory_space<vmem>>) attributes {dimension_semantics = [#tpu.dimension_semantics<parallel>], iteration_bounds = array<i64: 2>, scalar_prefetch = 0 : i64, scratch_operands = 0 : i64, tpu.core_type = #tpu.core_type<tc>, window_params = [{transform_indices = @transform_0, window_bounds = array<i64: 16, 260>}, {pipeline_mode = #tpu.pipeline_mode<synchronous>, transform_indices = @transform_1, window_bounds = array<i64: 260, 128>}, {transform_indices = @transform_2, window_bounds = array<i64: 16, 128>}]} {
    %c0 = arith.constant 0 : index
    %c0_0 = arith.constant 0 : index
    %0 = vector.load %arg1[%c0, %c0_0] : memref<16x260xbf16, #tpu.memory_space<vmem>>, vector<16x260xbf16>
    %c0_1 = arith.constant 0 : index
    %c0_2 = arith.constant 0 : index
    %1 = vector.load %arg2[%c0_1, %c0_2] : memref<260x128xbf16, #tpu.memory_space<vmem>>, vector<260x128xbf16>
    %cst = arith.constant dense<0.000000e+00> : vector<16x128xf32>
    %2 = tpu.matmul %0, %1, %cst {dimension_numbers = #tpu.dot_dimension_numbers<[1], [0], [0], [1], [0, 0, 1, 1], [], []>} : vector<16x260xbf16>, vector<260x128xbf16>, vector<16x128xf32> -> vector<16x128xf32>
    %3 = arith.truncf %2 : vector<16x128xf32> to vector<16x128xbf16>
    %c0_3 = arith.constant 0 : index
    %c0_4 = arith.constant 0 : index
    %4 = vector.load %arg3[%c0_3, %c0_4] : memref<16x128xbf16, #tpu.memory_space<vmem>>, vector<16x128xbf16>
    tpu.vector_store %arg3[%c0_3, %c0_4], %3 {strides = array<i32>} : memref<16x128xbf16, #tpu.memory_space<vmem>>, vector<16x128xbf16>,
    return
  }
  func.func @transform_0(%arg0: i32) -> (i32, i32) {
    %c0_i32 = arith.constant 0 : i32
    %c0_i32_0 = arith.constant 0 : i32
    return %arg0, %c0_i32 : i32, i32
  }
  func.func @transform_1(%arg0: i32) -> (i32, i32) {
    %c0_i32 = arith.constant 0 : i32
    %c0_i32_0 = arith.constant 0 : i32
    %c0_i32_1 = arith.constant 0 : i32
    return %c0_i32, %c0_i32_0 : i32, i32
  }
  func.func @transform_2(%arg0: i32) -> (i32, i32) {
    %c0_i32 = arith.constant 0 : i32
    %c0_i32_0 = arith.constant 0 : i32
    return %arg0, %c0_i32 : i32, i32
  }
}

module attributes {stable_mosaic.version = 11 : i64} {
  func.func @_matmul_bias_kernel(%arg0: i32, %arg1: memref<16x3xbf16, #tpu.memory_space<vmem>>, %arg2: memref<3x32xbf16, #tpu.memory_space<vmem>>, %arg3: memref<1x32xf32, #tpu.memory_space<vmem>>, %arg4: memref<16x32xbf16, #tpu.memory_space<vmem>>) attributes {dimension_semantics = [#tpu.dimension_semantics<parallel>], iteration_bounds = array<i64: 2>, scalar_prefetch = 0 : i64, scratch_operands = 0 : i64, tpu.core_type = #tpu.core_type<tc>, window_params = [{transform_indices = @transform_0, window_bounds = array<i64: 16, 3>}, {pipeline_mode = #tpu.pipeline_mode<synchronous>, transform_indices = @transform_1, window_bounds = array<i64: 3, 32>}, {pipeline_mode = #tpu.pipeline_mode<synchronous>, transform_indices = @transform_2, window_bounds = array<i64: 1, 32>}, {transform_indices = @transform_3, window_bounds = array<i64: 16, 32>}]} {
    %c0 = arith.constant 0 : index
    %c0_0 = arith.constant 0 : index
    %0 = vector.load %arg1[%c0, %c0_0] : memref<16x3xbf16, #tpu.memory_space<vmem>>, vector<16x3xbf16>
    %c0_1 = arith.constant 0 : index
    %c0_2 = arith.constant 0 : index
    %1 = vector.load %arg2[%c0_1, %c0_2] : memref<3x32xbf16, #tpu.memory_space<vmem>>, vector<3x32xbf16>
    %cst = arith.constant dense<0.000000e+00> : vector<16x32xf32>
    %2 = tpu.matmul %0, %1, %cst {dimension_numbers = #tpu.dot_dimension_numbers<[1], [0], [0], [1], [0, 0, 1, 1], [], []>} : vector<16x3xbf16>, vector<3x32xbf16>, vector<16x32xf32> -> vector<16x32xf32>
    %c0_3 = arith.constant 0 : index
    %c0_4 = arith.constant 0 : index
    %3 = vector.load %arg3[%c0_3, %c0_4] : memref<1x32xf32, #tpu.memory_space<vmem>>, vector<1x32xf32>
    %4 = vector.broadcast %3 : vector<1x32xf32> to vector<16x32xf32>
    %5 = arith.addf %2, %4 : vector<16x32xf32>
    %6 = arith.truncf %5 : vector<16x32xf32> to vector<16x32xbf16>
    %c0_5 = arith.constant 0 : index
    %c0_6 = arith.constant 0 : index
    %7 = vector.load %arg4[%c0_5, %c0_6] : memref<16x32xbf16, #tpu.memory_space<vmem>>, vector<16x32xbf16>
    tpu.vector_store %arg4[%c0_5, %c0_6], %6 {strides = array<i32>} : memref<16x32xbf16, #tpu.memory_space<vmem>>, vector<16x32xbf16>,
    return
  }
  func.func @transform_0(%arg0: i32) -> (i32, i32) {
    %c0_i32 = arith.constant 0 : i32
    %c0_i32_0 = arith.constant 0 : i32
    return %arg0, %c0_i32 : i32, i32
  }
  func.func @transform_1(%arg0: i32) -> (i32, i32) {
    %c0_i32 = arith.constant 0 : i32
    %c0_i32_0 = arith.constant 0 : i32
    %c0_i32_1 = arith.constant 0 : i32
    return %c0_i32, %c0_i32_0 : i32, i32
  }
  func.func @transform_2(%arg0: i32) -> (i32, i32) {
    %c0_i32 = arith.constant 0 : i32
    %c0_i32_0 = arith.constant 0 : i32
    %c0_i32_1 = arith.constant 0 : i32
    return %c0_i32, %c0_i32_0 : i32, i32
  }
  func.func @transform_3(%arg0: i32) -> (i32, i32) {
    %c0_i32 = arith.constant 0 : i32
    %c0_i32_0 = arith.constant 0 : i32
    return %arg0, %c0_i32 : i32, i32
  }
}

module attributes {stable_mosaic.version = 11 : i64} {
  func.func @_matmul_kernel(%arg0: i32, %arg1: memref<32x148xbf16, #tpu.memory_space<vmem>>, %arg2: memref<148x128xbf16, #tpu.memory_space<vmem>>, %arg3: memref<32x128xbf16, #tpu.memory_space<vmem>>) attributes {dimension_semantics = [#tpu.dimension_semantics<parallel>], iteration_bounds = array<i64: 2>, scalar_prefetch = 0 : i64, scratch_operands = 0 : i64, tpu.core_type = #tpu.core_type<tc>, window_params = [{transform_indices = @transform_0, window_bounds = array<i64: 32, 148>}, {pipeline_mode = #tpu.pipeline_mode<synchronous>, transform_indices = @transform_1, window_bounds = array<i64: 148, 128>}, {transform_indices = @transform_2, window_bounds = array<i64: 32, 128>}]} {
    %c0 = arith.constant 0 : index
    %c0_0 = arith.constant 0 : index
    %0 = vector.load %arg1[%c0, %c0_0] : memref<32x148xbf16, #tpu.memory_space<vmem>>, vector<32x148xbf16>
    %c0_1 = arith.constant 0 : index
    %c0_2 = arith.constant 0 : index
    %1 = vector.load %arg2[%c0_1, %c0_2] : memref<148x128xbf16, #tpu.memory_space<vmem>>, vector<148x128xbf16>
    %cst = arith.constant dense<0.000000e+00> : vector<32x128xf32>
    %2 = tpu.matmul %0, %1, %cst {dimension_numbers = #tpu.dot_dimension_numbers<[1], [0], [0], [1], [0, 0, 1, 1], [], []>} : vector<32x148xbf16>, vector<148x128xbf16>, vector<32x128xf32> -> vector<32x128xf32>
    %3 = arith.truncf %2 : vector<32x128xf32> to vector<32x128xbf16>
    %c0_3 = arith.constant 0 : index
    %c0_4 = arith.constant 0 : index
    %4 = vector.load %arg3[%c0_3, %c0_4] : memref<32x128xbf16, #tpu.memory_space<vmem>>, vector<32x128xbf16>
    tpu.vector_store %arg3[%c0_3, %c0_4], %3 {strides = array<i32>} : memref<32x128xbf16, #tpu.memory_space<vmem>>, vector<32x128xbf16>,
    return
  }
  func.func @transform_0(%arg0: i32) -> (i32, i32) {
    %c0_i32 = arith.constant 0 : i32
    %c0_i32_0 = arith.constant 0 : i32
    return %arg0, %c0_i32 : i32, i32
  }
  func.func @transform_1(%arg0: i32) -> (i32, i32) {
    %c0_i32 = arith.constant 0 : i32
    %c0_i32_0 = arith.constant 0 : i32
    %c0_i32_1 = arith.constant 0 : i32
    return %c0_i32, %c0_i32_0 : i32, i32
  }
  func.func @transform_2(%arg0: i32) -> (i32, i32) {
    %c0_i32 = arith.constant 0 : i32
    %c0_i32_0 = arith.constant 0 : i32
    return %arg0, %c0_i32 : i32, i32
  }
}

module attributes {stable_mosaic.version = 11 : i64} {
  func.func @_matmul_bias_kernel(%arg0: i32, %arg1: memref<64x3xbf16, #tpu.memory_space<vmem>>, %arg2: memref<3x16xbf16, #tpu.memory_space<vmem>>, %arg3: memref<1x16xf32, #tpu.memory_space<vmem>>, %arg4: memref<64x16xbf16, #tpu.memory_space<vmem>>) attributes {dimension_semantics = [#tpu.dimension_semantics<parallel>], iteration_bounds = array<i64: 2>, scalar_prefetch = 0 : i64, scratch_operands = 0 : i64, tpu.core_type = #tpu.core_type<tc>, window_params = [{transform_indices = @transform_0, window_bounds = array<i64: 64, 3>}, {pipeline_mode = #tpu.pipeline_mode<synchronous>, transform_indices = @transform_1, window_bounds = array<i64: 3, 16>}, {pipeline_mode = #tpu.pipeline_mode<synchronous>, transform_indices = @transform_2, window_bounds = array<i64: 1, 16>}, {transform_indices = @transform_3, window_bounds = array<i64: 64, 16>}]} {
    %c0 = arith.constant 0 : index
    %c0_0 = arith.constant 0 : index
    %0 = vector.load %arg1[%c0, %c0_0] : memref<64x3xbf16, #tpu.memory_space<vmem>>, vector<64x3xbf16>
    %c0_1 = arith.constant 0 : index
    %c0_2 = arith.constant 0 : index
    %1 = vector.load %arg2[%c0_1, %c0_2] : memref<3x16xbf16, #tpu.memory_space<vmem>>, vector<3x16xbf16>
    %cst = arith.constant dense<0.000000e+00> : vector<64x16xf32>
    %2 = tpu.matmul %0, %1, %cst {dimension_numbers = #tpu.dot_dimension_numbers<[1], [0], [0], [1], [0, 0, 1, 1], [], []>} : vector<64x3xbf16>, vector<3x16xbf16>, vector<64x16xf32> -> vector<64x16xf32>
    %c0_3 = arith.constant 0 : index
    %c0_4 = arith.constant 0 : index
    %3 = vector.load %arg3[%c0_3, %c0_4] : memref<1x16xf32, #tpu.memory_space<vmem>>, vector<1x16xf32>
    %4 = vector.broadcast %3 : vector<1x16xf32> to vector<64x16xf32>
    %5 = arith.addf %2, %4 : vector<64x16xf32>
    %6 = arith.truncf %5 : vector<64x16xf32> to vector<64x16xbf16>
    %c0_5 = arith.constant 0 : index
    %c0_6 = arith.constant 0 : index
    %7 = vector.load %arg4[%c0_5, %c0_6] : memref<64x16xbf16, #tpu.memory_space<vmem>>, vector<64x16xbf16>
    tpu.vector_store %arg4[%c0_5, %c0_6], %6 {strides = array<i32>} : memref<64x16xbf16, #tpu.memory_space<vmem>>, vector<64x16xbf16>,
    return
  }
  func.func @transform_0(%arg0: i32) -> (i32, i32) {
    %c0_i32 = arith.constant 0 : i32
    %c0_i32_0 = arith.constant 0 : i32
    return %arg0, %c0_i32 : i32, i32
  }
  func.func @transform_1(%arg0: i32) -> (i32, i32) {
    %c0_i32 = arith.constant 0 : i32
    %c0_i32_0 = arith.constant 0 : i32
    %c0_i32_1 = arith.constant 0 : i32
    return %c0_i32, %c0_i32_0 : i32, i32
  }
  func.func @transform_2(%arg0: i32) -> (i32, i32) {
    %c0_i32 = arith.constant 0 : i32
    %c0_i32_0 = arith.constant 0 : i32
    %c0_i32_1 = arith.constant 0 : i32
    return %c0_i32, %c0_i32_0 : i32, i32
  }
  func.func @transform_3(%arg0: i32) -> (i32, i32) {
    %c0_i32 = arith.constant 0 : i32
    %c0_i32_0 = arith.constant 0 : i32
    return %arg0, %c0_i32 : i32, i32
  }
}

module attributes {stable_mosaic.version = 11 : i64} {
  func.func @_matmul_kernel(%arg0: i32, %arg1: memref<88x84xbf16, #tpu.memory_space<vmem>>, %arg2: memref<84x256xbf16, #tpu.memory_space<vmem>>, %arg3: memref<88x256xf32, #tpu.memory_space<vmem>>) attributes {dimension_semantics = [#tpu.dimension_semantics<parallel>], iteration_bounds = array<i64: 2>, scalar_prefetch = 0 : i64, scratch_operands = 0 : i64, tpu.core_type = #tpu.core_type<tc>, window_params = [{transform_indices = @transform_0, window_bounds = array<i64: 88, 84>}, {pipeline_mode = #tpu.pipeline_mode<synchronous>, transform_indices = @transform_1, window_bounds = array<i64: 84, 256>}, {transform_indices = @transform_2, window_bounds = array<i64: 88, 256>}]} {
    %c0 = arith.constant 0 : index
    %c0_0 = arith.constant 0 : index
    %0 = vector.load %arg1[%c0, %c0_0] : memref<88x84xbf16, #tpu.memory_space<vmem>>, vector<88x84xbf16>
    %c0_1 = arith.constant 0 : index
    %c0_2 = arith.constant 0 : index
    %1 = vector.load %arg2[%c0_1, %c0_2] : memref<84x256xbf16, #tpu.memory_space<vmem>>, vector<84x256xbf16>
    %cst = arith.constant dense<0.000000e+00> : vector<88x256xf32>
    %2 = tpu.matmul %0, %1, %cst {dimension_numbers = #tpu.dot_dimension_numbers<[1], [0], [0], [1], [0, 0, 1, 1], [], []>} : vector<88x84xbf16>, vector<84x256xbf16>, vector<88x256xf32> -> vector<88x256xf32>
    %c0_3 = arith.constant 0 : index
    %c0_4 = arith.constant 0 : index
    %3 = vector.load %arg3[%c0_3, %c0_4] : memref<88x256xf32, #tpu.memory_space<vmem>>, vector<88x256xf32>
    tpu.vector_store %arg3[%c0_3, %c0_4], %2 {strides = array<i32>} : memref<88x256xf32, #tpu.memory_space<vmem>>, vector<88x256xf32>,
    return
  }
  func.func @transform_0(%arg0: i32) -> (i32, i32) {
    %c0_i32 = arith.constant 0 : i32
    %c0_i32_0 = arith.constant 0 : i32
    return %arg0, %c0_i32 : i32, i32
  }
  func.func @transform_1(%arg0: i32) -> (i32, i32) {
    %c0_i32 = arith.constant 0 : i32
    %c0_i32_0 = arith.constant 0 : i32
    %c0_i32_1 = arith.constant 0 : i32
    return %c0_i32, %c0_i32_0 : i32, i32
  }
  func.func @transform_2(%arg0: i32) -> (i32, i32) {
    %c0_i32 = arith.constant 0 : i32
    %c0_i32_0 = arith.constant 0 : i32
    return %arg0, %c0_i32 : i32, i32
  }
}

module attributes {stable_mosaic.version = 11 : i64} {
  func.func @_ce_kernel(%arg0: i32, %arg1: i32, %arg2: memref<1x4x2048xf32, #tpu.memory_space<vmem>>, %arg3: memref<1x1x2048xi32, #tpu.memory_space<vmem>>, %arg4: memref<1x4x1xf32, #tpu.memory_space<vmem>>, %arg5: memref<1x1xf32, #tpu.memory_space<vmem>>, %arg6: memref<1x1xf32, #tpu.memory_space<vmem>>) attributes {dimension_semantics = [#tpu.dimension_semantics<arbitrary>, #tpu.dimension_semantics<arbitrary>], iteration_bounds = array<i64: 2, 2>, scalar_prefetch = 0 : i64, scratch_operands = 0 : i64, tpu.core_type = #tpu.core_type<tc>, window_params = [{transform_indices = @transform_0, window_bounds = array<i64: 1, 4, 2048>}, {transform_indices = @transform_1, window_bounds = array<i64: 1, 1, 2048>}, {pipeline_mode = #tpu.pipeline_mode<synchronous>, transform_indices = @transform_2, window_bounds = array<i64: 1, 4, 1>}, {pipeline_mode = #tpu.pipeline_mode<synchronous>, transform_indices = @transform_3, window_bounds = array<i64: 1, 1>}, {pipeline_mode = #tpu.pipeline_mode<synchronous>, transform_indices = @transform_4, window_bounds = array<i64: 1, 1>}]} {
    %0 = arith.addi %arg0, %arg1 : i32
    %c0_i32 = arith.constant 0 : i32
    %1 = arith.cmpi eq, %0, %c0_i32 : i32
    %2 = arith.extui %1 : i1 to i32
    %c0_i32_0 = arith.constant 0 : i32
    %3 = arith.cmpi ne, %2, %c0_i32_0 : i32
    scf.if %3 {
      %cst_23 = arith.constant 0.000000e+00 : f32
      %50 = vector.broadcast %cst_23 : f32 to vector<1x1xf32>
      %c0_24 = arith.constant 0 : index
      %c0_25 = arith.constant 0 : index
      %51 = vector.load %arg5[%c0_24, %c0_25] : memref<1x1xf32, #tpu.memory_space<vmem>>, vector<1x1xf32>
      tpu.vector_store %arg5[%c0_24, %c0_25], %50 {strides = array<i32>} : memref<1x1xf32, #tpu.memory_space<vmem>>, vector<1x1xf32>,
      %cst_26 = arith.constant 0.000000e+00 : f32
      %52 = vector.broadcast %cst_26 : f32 to vector<1x1xf32>
      %c0_27 = arith.constant 0 : index
      %c0_28 = arith.constant 0 : index
      %53 = vector.load %arg6[%c0_27, %c0_28] : memref<1x1xf32, #tpu.memory_space<vmem>>, vector<1x1xf32>
      tpu.vector_store %arg6[%c0_27, %c0_28], %52 {strides = array<i32>} : memref<1x1xf32, #tpu.memory_space<vmem>>, vector<1x1xf32>,
    } else {
    }
    %c0 = arith.constant 0 : index
    %c0_1 = arith.constant 0 : index
    %c0_2 = arith.constant 0 : index
    %4 = vector.load %arg2[%c0, %c0_1, %c0_2] : memref<1x4x2048xf32, #tpu.memory_space<vmem>>, vector<1x4x2048xf32>
    %c0_3 = arith.constant 0 : index
    %c0_4 = arith.constant 0 : index
    %c0_5 = arith.constant 0 : index
    %5 = vector.load %arg3[%c0_3, %c0_4, %c0_5] : memref<1x1x2048xi32, #tpu.memory_space<vmem>>, vector<1x1x2048xi32>
    %cst = arith.constant dense<0xFF800000> : vector<1x2048xf32>
    %6 = vector.multi_reduction <maximumf>, %4, %cst [1] : vector<1x4x2048xf32> to vector<1x2048xf32>
    %7 = vector.shape_cast %6 : vector<1x2048xf32> to vector<1x1x2048xf32>
    %8 = vector.broadcast %7 : vector<1x1x2048xf32> to vector<1x4x2048xf32>
    %9 = arith.subf %4, %8 : vector<1x4x2048xf32>
    %10 = math.exp %9 : vector<1x4x2048xf32>
    %cst_6 = arith.constant dense<0.000000e+00> : vector<1x2048xf32>
    %11 = vector.multi_reduction <add>, %10, %cst_6 [1] : vector<1x4x2048xf32> to vector<1x2048xf32>
    %12 = vector.shape_cast %11 : vector<1x2048xf32> to vector<1x1x2048xf32>
    %13 = math.log %12 : vector<1x1x2048xf32>
    %14 = arith.addf %7, %13 : vector<1x1x2048xf32>
    %15 = tpu.iota {dimensions = array<i32: 1>} : vector<1x4x2048xi32>
    %16 = vector.broadcast %5 : vector<1x1x2048xi32> to vector<1x4x2048xi32>
    %17 = arith.cmpi eq, %15, %16 : vector<1x4x2048xi32>
    %18 = arith.extui %17 : vector<1x4x2048xi1> to vector<1x4x2048xi32>
    %19 = arith.sitofp %18 : vector<1x4x2048xi32> to vector<1x4x2048xf32>
    %20 = arith.mulf %4, %19 : vector<1x4x2048xf32>
    %cst_7 = arith.constant dense<0.000000e+00> : vector<1x2048xf32>
    %21 = vector.multi_reduction <add>, %20, %cst_7 [1] : vector<1x4x2048xf32> to vector<1x2048xf32>
    %22 = vector.shape_cast %21 : vector<1x2048xf32> to vector<1x1x2048xf32>
    %c0_8 = arith.constant 0 : index
    %c0_9 = arith.constant 0 : index
    %c0_10 = arith.constant 0 : index
    %23 = vector.load %arg4[%c0_8, %c0_9, %c0_10] : memref<1x4x1xf32, #tpu.memory_space<vmem>>, vector<1x4x1xf32>
    %24 = vector.broadcast %23 : vector<1x4x1xf32> to vector<1x4x2048xf32>
    %25 = arith.mulf %24, %19 : vector<1x4x2048xf32>
    %cst_11 = arith.constant dense<0.000000e+00> : vector<1x2048xf32>
    %26 = vector.multi_reduction <add>, %25, %cst_11 [1] : vector<1x4x2048xf32> to vector<1x2048xf32>
    %27 = vector.shape_cast %26 : vector<1x2048xf32> to vector<1x1x2048xf32>
    %c-1_i32 = arith.constant -1 : i32
    %28 = vector.broadcast %c-1_i32 : i32 to vector<1x1x2048xi32>
    %29 = arith.cmpi ne, %5, %28 : vector<1x1x2048xi32>
    %cst_12 = arith.constant 0.000000e+00 : f32
    %30 = vector.broadcast %cst_12 : f32 to vector<1x1x2048xf32>
    %31 = arith.select %29, %27, %30 : vector<1x1x2048xi1>, vector<1x1x2048xf32>
    %32 = arith.subf %14, %22 : vector<1x1x2048xf32>
    %c0_13 = arith.constant 0 : index
    %c0_14 = arith.constant 0 : index
    %33 = vector.load %arg5[%c0_13, %c0_14] : memref<1x1xf32, #tpu.memory_space<vmem>>, vector<1x1xf32>
    %34 = arith.mulf %31, %32 : vector<1x1x2048xf32>
    %35 = vector.shape_cast %34 : vector<1x1x2048xf32> to vector<1x1x1x2048xf32>
    %cst_15 = arith.constant dense<0.000000e+00> : vector<1xf32>
    %36 = vector.multi_reduction <add>, %35, %cst_15 [1, 2, 3] : vector<1x1x1x2048xf32> to vector<1xf32>
    %37 = vector.shape_cast %36 : vector<1xf32> to vector<1x1x1x1xf32>
    %38 = vector.extract %37[0, 0, 0, 0] : f32 from vector<1x1x1x1xf32>
    %39 = vector.broadcast %38 : f32 to vector<1x1xf32>
    %40 = arith.addf %33, %39 : vector<1x1xf32>
    %c0_16 = arith.constant 0 : index
    %c0_17 = arith.constant 0 : index
    %41 = vector.load %arg5[%c0_16, %c0_17] : memref<1x1xf32, #tpu.memory_space<vmem>>, vector<1x1xf32>
    tpu.vector_store %arg5[%c0_16, %c0_17], %40 {strides = array<i32>} : memref<1x1xf32, #tpu.memory_space<vmem>>, vector<1x1xf32>,
    %c0_18 = arith.constant 0 : index
    %c0_19 = arith.constant 0 : index
    %42 = vector.load %arg6[%c0_18, %c0_19] : memref<1x1xf32, #tpu.memory_space<vmem>>, vector<1x1xf32>
    %43 = vector.shape_cast %31 : vector<1x1x2048xf32> to vector<1x1x1x2048xf32>
    %cst_20 = arith.constant dense<0.000000e+00> : vector<1xf32>
    %44 = vector.multi_reduction <add>, %43, %cst_20 [1, 2, 3] : vector<1x1x1x2048xf32> to vector<1xf32>
    %45 = vector.shape_cast %44 : vector<1xf32> to vector<1x1x1x1xf32>
    %46 = vector.extract %45[0, 0, 0, 0] : f32 from vector<1x1x1x1xf32>
    %47 = vector.broadcast %46 : f32 to vector<1x1xf32>
    %48 = arith.addf %42, %47 : vector<1x1xf32>
    %c0_21 = arith.constant 0 : index
    %c0_22 = arith.constant 0 : index
    %49 = vector.load %arg6[%c0_21, %c0_22] : memref<1x1xf32, #tpu.memory_space<vmem>>, vector<1x1xf32>
    tpu.vector_store %arg6[%c0_21, %c0_22], %48 {strides = array<i32>} : memref<1x1xf32, #tpu.memory_space<vmem>>, vector<1x1xf32>,
    return
  }
  func.func @transform_0(%arg0: i32, %arg1: i32) -> (i32, i32, i32) {
    %c0_i32 = arith.constant 0 : i32
    %c0_i32_0 = arith.constant 0 : i32
    return %arg0, %c0_i32, %arg1 : i32, i32, i32
  }
  func.func @transform_1(%arg0: i32, %arg1: i32) -> (i32, i32, i32) {
    %c0_i32 = arith.constant 0 : i32
    %c0_i32_0 = arith.constant 0 : i32
    return %arg0, %c0_i32, %arg1 : i32, i32, i32
  }
  func.func @transform_2(%arg0: i32, %arg1: i32) -> (i32, i32, i32) {
    %c0_i32 = arith.constant 0 : i32
    %c0_i32_0 = arith.constant 0 : i32
    %c0_i32_1 = arith.constant 0 : i32
    %c0_i32_2 = arith.constant 0 : i32
    return %c0_i32, %c0_i32_0, %c0_i32_1 : i32, i32, i32
  }
  func.func @transform_3(%arg0: i32, %arg1: i32) -> (i32, i32) {
    %c0_i32 = arith.constant 0 : i32
    %c0_i32_0 = arith.constant 0 : i32
    %c0_i32_1 = arith.constant 0 : i32
    return %c0_i32, %c0_i32_0 : i32, i32
  }
  func.func @transform_4(%arg0: i32, %arg1: i32) -> (i32, i32) {
    %c0_i32 = arith.constant 0 : i32
    %c0_i32_0 = arith.constant 0 : i32
    %c0_i32_1 = arith.constant 0 : i32
    return %c0_i32, %c0_i32_0 : i32, i32
  }
}

</mosaic_0001>

<bundles_post_ra>
// kernel: fcn_forward.9
= control target key start
LH: loop header
LB: loop body
LE: loop exit
PB: predicated region body
PF: predicated region fallthrough
CT: control target
= control target key end

     0   :  { %8 = vsyncpa [#allocation3], 0  ;;  %s133_s12 = smov [#allocation2]   ;;  %s178_s0 = inlined_call_operand.vmem [shape: bf16[8,3], index: 0, kind: input, shape index: {}]   ;;  %s179_s1 = inlined_call_operand.vmem [shape: bf16[3,64], index: 1, kind: input, shape index: {}]   ;;  %s180_s2 = inlined_call_operand.hbm [shape: f32[1,64], index: 2, kind: input, shape index: {}]   ;;  %s181_s3 = inlined_call_operand.vmem [shape: bf16[8,64], index: 3, kind: output, shape index: {}]  }
   0x1   :  { %s19_s13 = sshll.u32 %s133_s12, 4  ;;  %s109_s16 = scalar_lea.hbm %s180_s2, 16  ;;  %s20_s13 = int_to_ptr.vmem [resolvable:$true] %s19_s13 }
   0x2   :  { %p110_p0 = scmp.ne.s32.totalorder %s180_s2, %s109_s16  ;;  %p113_p1 = scmp.lt.u32.totalorder %s109_s16, %s180_s2 }
   0x4   :  { %p115_p2 = pnand %p113_p1, %p110_p0 }
   0x6   :  { %118 = shalt.err (!%p115_p2)
}
   0x7   :  { %s119_s21 = scalar_lea.vmem %s20_s13, 16  ;;  %s123_s22 = scalar_lea.vmem %s20_s13, 32 }
   0x8   :  { %p120_p3 = scmp.ne.s32.totalorder %s20_s13, %s119_s21  ;;  %p124_p4 = scmp.lt.s32.totalorder %s20_s13, %s20_s13 }
   0x9   :  { %p125_p5 = scmp.lt.s32.totalorder %s123_s22, %s119_s21 }
   0xb   :  { %p126_p6 = por %p125_p5, %p124_p4 }
   0xd   :  { %p127_p7 = pnand %p126_p6, %p120_p3 }
   0xf   :  { %130 = shalt.err (!%p127_p7)
}
  0x10   :  { %22 = dma.hbm_to_vmem [thread:$0]  %s180_s2, 16, %s20_s13, [#allocation3]  }
  0x11   :  { %131 = dma.done.wait [#allocation3], 16  }
  0x12   :  { %132 = vsyncadd [#allocation3], 4294967280  ;;  %vm40_vm0 = vcmask 1040384   ;;  %v134_v0 = vmov 0.0   ;;  %vm41_vm1 = vcmask 1041408   ;;  %v135_v1 = vmov 65535  }
  0x13   :  { %99 = vmatprep.subr.bf16.mxu0 %v134_v0  ;;  %v42_v2 = vsel %vm40_vm0, 4294967295, %v135_v1  ;;  %vm136_vm2 = vmmov 0   ;;  %v28_v4 = vld [vmem:[%s179_s1] sm:$0x3]  ;;  %vm36_vm3 = vcmask 23552   ;;  %vm88_vm4 = vcmask 519168  }
  0x14   :  { %101 = vmatprep.mubr.msk.bf16.mxu0 %vm136_vm2, %v134_v0  ;;  %v43_v3 = vsel %vm41_vm1, %v42_v2, 0  ;;  %v27_v6 = vld [vmem:[%s178_s0] sm:$0xf] }
  0x15   :  { %v45_v5 = vand.u32 %v43_v3, %v28_v4  ;;  %v95_v7 = vld [vmem:[#allocation2] ss:$0 sm:$0xff] }
  0x17   :  { %100 = vmatpush3.bf16.msra.mxu0 %v45_v5 }
  0x1a   :  { %102 = vmatmul.mubr.msk.bf16.vlgmr.msra.gmra.mrb[0].mxu0 %vm36_vm3, %v27_v6 }
  0xed   :  { %v81_v8 = vpop.f32.mrb[0].mxu0 }
  0xee   :  { %v82_v9 = vadd.f32 %v95_v7, %v81_v8  ;;  %v103_v10 = vpop.f32.mrb[1].mxu0 }
  0xef   :  { %v84_v11 = vpop.f32.mrb[2].mxu0 }
  0xf0   :  { %v87_v12 = vpack.c.bf16 %v82_v9, %v82_v9  ;;  %v104_v13 = vpop.f32.mrb[3].mxu0 }
  0xf2   :  { %89 = vst.msk [vmem:[%s181_s3] sm:$0xf] %vm88_vm4, %v87_v12 }
  0xf3   :  { %94 = vsyncpa [#allocation3], 1 }

// kernel: fcn_forward.8
= control target key start
LH: loop header
LB: loop body
LE: loop exit
PB: predicated region body
PF: predicated region fallthrough
CT: control target
= control target key end

     0   :  { %s378_s12 = smov 0   ;;  %s401_s0 = inlined_call_operand.vmem [shape: bf16[32,3], index: 0, kind: input, shape index: {}]   ;;  %s402_s1 = inlined_call_operand.vmem [shape: bf16[3,32], index: 1, kind: input, shape index: {}]   ;;  %s403_s2 = inlined_call_operand.vmem [shape: f32[1,32], index: 2, kind: input, shape index: {}]   ;;  %s404_s3 = inlined_call_operand.vmem [shape: bf16[32,32], index: 3, kind: output, shape index: {}]  }
   0x1 LB: > { %s309_s13 = sadd.s32 4294967295, %s353_s12   ;;  %p313_p0 = scmp.ge.s32.totalorder %s353_s12, 1  ;;  %s353_s12 = sphi %s378_s12, %s13_s12  }
   0x2   : > { %p138_p1 = scmp.lt.s32.totalorder %s353_s12, 3 }
   0x4   : > { %p139_p2 = pnand %p313_p0, %p138_p1 }
   0x5   : > { %v177_v0 = vld [vmem:[%s402_s1] sm:$0x3] (!%p139_p2)  ;;  %vm194_vm0 = vcmask (!%p139_p2), 1040384   ;;  %vm195_vm1 = vcmask (!%p139_p2), 1041408   ;;  %v355_v1 = vmov (!%p139_p2), 0.0   ;;  %v356_v2 = vmov (!%p139_p2), 65535  }
   0x6   : > { %142 = sbr.rel (%p139_p2) target bundleno = 236 (0xec), region = 32  ;;  %329 = vmatprep.subr.bf16.mxu0 (!%p139_p2), %v355_v1  ;;  %v196_v3 = vsel (!%p139_p2), %vm194_vm0, 4294967295, %v356_v2  ;;  %s314_s16 = sshll.u32 (!%p139_p2), %s309_s13, 1  ;;  %vm357_vm2 = vmmov (!%p139_p2), 0   ;;  %vm190_vm3 = vcmask (!%p139_p2), 23552   ;;  %vm250_vm4 = vcmask (!%p139_p2), 257024  }
   0x7   : > { %v197_v4 = vsel (!%p139_p2), %vm195_vm1, %v196_v3, 0  ;;  %331 = vmatprep.mubr.msk.bf16.mxu0 (!%p139_p2), %vm357_vm2, %v355_v1  ;;  %p163_p3 = scmp.lt.s32.totalorder (!%p139_p2), %s314_s16, 3  ;;  %v318_v7 = vld [vmem:[%s403_s2] ss:$0 sm:$0xff] (!%p139_p2) }
   0x8   : > { %v199_v5 = vand.u32 (!%p139_p2), %v197_v4, %v177_v0 }
   0xa   : > { %330 = vmatpush3.bf16.msra.mxu0 (!%p139_p2), %v199_v5 }
   0xd   : > { %s406_s16 = smov (!%p163_p3, %s314_s16), 3 }
   0xe   : > { %s315_s17 = sshll.u32 %s406_s16, 2 }
   0xf   : > { %s166_s20 = scalar_lea.vmem %s401_s0, %s315_s17  ;;  %s172_s25 = scalar_lea.vmem %s404_s3, %s315_s17 }
  0x10   : > { %v346_v6 = vld [vmem:[%s166_s20] sm:$0xff]  }
  0x11   : > { %332 = vmatmul.mubr.msk.bf16.vlgmr.msra.gmra.mrb[0].mxu0 %vm190_vm3, %v346_v6 }
  0xe4   : > { %v235_v8 = vpop.f32.mrb[0].mxu0 }
  0xe5   : > { %v236_v9 = vadd.f32 %v318_v7, %v235_v8  ;;  %v333_v10 = vpop.f32.mrb[1].mxu0 }
  0xe6   : > { %v238_v11 = vpop.f32.mrb[2].mxu0 }
  0xe7   : > { %v325_v12 = vpack.c.bf16 %v236_v9, %v236_v9  ;;  %v239_v13 = vadd.f32 %v318_v7, %v238_v11  ;;  %v334_v14 = vpop.f32.mrb[3].mxu0 }
  0xe9   : > { %251 = vst.msk [vmem:[%s172_s25] sm:$0xf] %vm250_vm4, %v325_v12  ;;  %v326_v15 = vpack.c.bf16 %v239_v13, %v239_v13 }
  0xeb   : > { %252 = vst.msk [vmem:[%s172_s25 + $0x4] sm:$0xf] %vm250_vm4, %v326_v15 }
  0xec PF: > { %s13_s12 = sadd.s32 1, %s353_s12  }
  0xed   : > { %p10_p4 = scmp.ge.s32.totalorder %s13_s12, 4  }
  0xef   :  { %12 = sbr.rel (!%p10_p4) target bundleno = 1 (0x1), region = 62 }

// kernel: fcn_forward.10
= control target key start
LH: loop header
LB: loop body
LE: loop exit
PB: predicated region body
PF: predicated region fallthrough
CT: control target
= control target key end

     0   :  { %s586_s9 = smov 0   ;;  %s658_s0 = inlined_call_operand.vmem [shape: bf16[32,260], index: 0, kind: input, shape index: {}]   ;;  %s659_s1 = inlined_call_operand.vmem [shape: bf16[260,128], index: 1, kind: input, shape index: {}]   ;;  %s660_s2 = inlined_call_operand.vmem [shape: bf16[32,128], index: 2, kind: output, shape index: {}]  }
   0x1 LB: > { %s458_s10 = sadd.s32 4294967295, %s567_s9   ;;  %p462_p0 = scmp.ge.s32.totalorder %s567_s9, 1  ;;  %s567_s9 = sphi %s586_s9, %s12_s9  }
   0x2   : > { %p114_p1 = scmp.lt.s32.totalorder %s567_s9, 3 }
   0x4   : > { %p115_p2 = pnand %p462_p0, %p114_p1 }
   0x5   : > { %v540_v0 = vld [vmem:[%s659_s1 + $0x40] sm:$0xff] (!%p115_p2)   ;;  %v569_v2 = vmov (!%p115_p2), 0.0   ;;  %v542_v3 = vld [vmem:[%s659_s1 + $0x48] sm:$0xff] (!%p115_p2)   ;;  %s463_s17 = sshll.u32 (!%p115_p2), %s458_s10, 1  ;;  %v544_v5 = vld [vmem:[%s659_s1 + $0x50] sm:$0xff] (!%p115_p2)   ;;  %vm570_vm0 = vmmov (!%p115_p2), 0  }
   0x6   : > { %118 = sbr.rel (%p115_p2) target bundleno = 260 (0x104), region = 28  ;;  %v541_v1 = vld [vmem:[%s659_s1] sm:$0xff] (!%p115_p2)   ;;  %523 = vmatprep.subr.bf16.mxu1 (!%p115_p2), %v569_v2  ;;  %499 = vmatprep.subr.bf16.mxu0 (!%p115_p2), %v540_v0  ;;  %v543_v4 = vld [vmem:[%s659_s1 + $0x8] sm:$0xff] (!%p115_p2)   ;;  %p138_p3 = scmp.lt.s32.totalorder (!%p115_p2), %s463_s17, 3  ;;  %v545_v6 = vld [vmem:[%s659_s1 + $0x10] sm:$0xff] (!%p115_p2)   ;;  %vm306_vm1 = vcmask (!%p115_p2), 1041408  }
   0x7   : > { %500 = vmatpush3.bf16.msra.mxu0 (!%p115_p2), %v541_v1  ;;  %525 = vmatprep.mubr.msk.bf16.mxu1 (!%p115_p2), %vm570_vm0, %v569_v2  ;;  %v546_v7 = vld [vmem:[%s659_s1 + $0x58] sm:$0xff] (!%p115_p2)   ;;  %v548_v9 = vld [vmem:[%s659_s1 + $0x60] sm:$0xff] (!%p115_p2)   ;;  %v550_v11 = vld [vmem:[%s659_s1 + $0x68] sm:$0xff] (!%p115_p2)   ;;  %vm302_vm2 = vcmask (!%p115_p2), 31744  }
   0x8   : > { %501 = vmatprep.subr.bf16.mxu0 (!%p115_p2), %v542_v3  ;;  %v547_v8 = vld [vmem:[%s659_s1 + $0x18] sm:$0xff] (!%p115_p2)   ;;  %v549_v10 = vld [vmem:[%s659_s1 + $0x20] sm:$0xff] (!%p115_p2)   ;;  %v551_v15 = vld [vmem:[%s659_s1 + $0x28] sm:$0xff] (!%p115_p2)  }
   0x9   : > { %v556_v12 = vld [vmem:[%s659_s1 + $0x80] ss:$0 sps:$4 sm:$0x33] (!%p115_p2)   ;;  %v552_v17 = vld [vmem:[%s659_s1 + $0x70] sm:$0xff] (!%p115_p2)   ;;  %v554_v19 = vld [vmem:[%s659_s1 + $0x78] sm:$0xff] (!%p115_p2)  }
   0xa   : > { %v308_v14 = vsel (!%p115_p2), %vm306_vm1, %v556_v12, 0  ;;  %v553_v18 = vld [vmem:[%s659_s1 + $0x30] sm:$0xff] (!%p115_p2)   ;;  %v555_v20 = vld [vmem:[%s659_s1 + $0x38] sm:$0xff] (!%p115_p2)  }
   0xb   : > { %502 = vmatpush3.bf16.msra.mxu0 (!%p115_p2), %v543_v4  ;;  %524 = vmatpush3.bf16.msra.mxu1 (!%p115_p2), %v308_v14 }
   0xc   : > { %503 = vmatprep.subr.bf16.mxu0 (!%p115_p2), %v544_v5 }
   0xd   : > { %s662_s17 = smov (!%p138_p3, %s463_s17), 3 }
   0xe   : > { %s529_s26 = smul.u32 12, %s662_s17  ;;  %s466_s24 = sshll.u32 %s662_s17, 2 }
   0xf   : > { %504 = vmatpush3.bf16.msra.mxu0 %v545_v6  ;;  %s148_s27 = scalar_lea.vmem %s660_s2, %s466_s24 }
  0x10   : > { %505 = vmatprep.subr.bf16.mxu0 %v546_v7  ;;  %s142_s7 = scalar_lea.vmem %s658_s0, %s529_s26 }
  0x11   : > { %v559_v13 = vld [vmem:[%s142_s7 + $0x4] ss:$12 sps:$4 sm:$0xff]   ;;  %v560_v16 = vld [vmem:[%s142_s7 + $0x8] ss:$12 sps:$4 sm:$0xff]   ;;  %v557_v21 = vld [vmem:[%s142_s7] ss:$12 sps:$4 sm:$0xff]  }
  0x12   : > { %342 = vmatprep.mubr.bf16.mxu0 %v559_v13  ;;  %526 = vmatmul.mubr.msk.bf16.vlgmr.msra.gmra.mrb[0].mxu1 %vm302_vm2, %v560_v16 }
  0x13   : > { %506 = vmatpush3.bf16.msra.mxu0 %v547_v8 }
  0x14   : > { %507 = vmatprep.subr.bf16.mxu0 %v548_v9 }
  0x17   : > { %508 = vmatpush3.bf16.msra.mxu0 %v549_v10 }
  0x18   : > { %509 = vmatprep.subr.bf16.mxu0 %v550_v11 }
  0x1b   : > { %510 = vmatpush3.bf16.msra.mxu0 %v551_v15 }
  0x1c   : > { %511 = vmatprep.subr.bf16.mxu0 %v552_v17 }
  0x1f   : > { %512 = vmatpush3.bf16.msra.mxu0 %v553_v18 }
  0x20   : > { %513 = vmatprep.subr.bf16.mxu0 %v554_v19 }
  0x23   : > { %514 = vmatpush3.bf16.msra.mxu0 %v555_v20 }
  0x26   : > { %343 = vmatmul.mubr.bf16.vlgmr.msra.gmra.mrb[0].mxu0 %v557_v21 }
  0xe5   : > { %v385_v22 = vpop.f32.mrb[0].mxu1 }
  0xe6   : > { %v527_v23 = vpop.f32.mrb[1].mxu1 }
  0xe7   : > { %v388_v24 = vpop.f32.mrb[2].mxu1 }
  0xe8   : > { %v528_v25 = vpop.f32.mrb[3].mxu1 }
  0xf9   : > { %v515_v26 = vpop.f32.mrb[0].mxu0 }
  0xfa   : > { %v516_v27 = vpop.f32.mrb[1].mxu0 }
  0xfb   : > { %v517_v28 = vadd.f32 %v516_v27, %v515_v26  ;;  %v518_v29 = vpop.f32.mrb[2].mxu0 }
  0xfc   : > { %v519_v30 = vpop.f32.mrb[3].mxu0 }
  0xfd   : > { %v386_v31 = vadd.f32 %v517_v28, %v385_v22  ;;  %v520_v32 = vadd.f32 %v519_v30, %v518_v29 }
  0xff   : > { %v389_v33 = vadd.f32 %v520_v32, %v388_v24 }
 0x101   : > { %v497_v34 = vpack.c.bf16 %v389_v33, %v386_v31 }
 0x103   : > { %498 = vst [vmem:[%s148_s27] sm:$0xff] %v497_v34  }
 0x104 PF: > { %s12_s9 = sadd.s32 1, %s567_s9  }
 0x105   : > { %p9_p4 = scmp.ge.s32.totalorder %s12_s9, 4  }
 0x107   :  { %11 = sbr.rel (!%p9_p4) target bundleno = 1 (0x1), region = 58 }

// kernel: fcn_forward.11
= control target key start
LH: loop header
LB: loop body
LE: loop exit
PB: predicated region body
PF: predicated region fallthrough
CT: control target
= control target key end

     0   :  { %s502_s9 = smov 0   ;;  %s559_s0 = inlined_call_operand.vmem [shape: bf16[64,148], index: 0, kind: input, shape index: {}]   ;;  %s560_s1 = inlined_call_operand.vmem [shape: bf16[148,128], index: 1, kind: input, shape index: {}]   ;;  %s561_s2 = inlined_call_operand.vmem [shape: bf16[64,128], index: 2, kind: output, shape index: {}]  }
   0x1 LB: > { %s385_s10 = sadd.s32 4294967295, %s484_s9   ;;  %p389_p0 = scmp.ge.s32.totalorder %s484_s9, 1  ;;  %s484_s9 = sphi %s502_s9, %s12_s9  }
   0x2   : > { %p114_p1 = scmp.lt.s32.totalorder %s484_s9, 3 }
   0x4   : > { %p115_p2 = pnand %p389_p0, %p114_p1 }
   0x5   : > { %v462_v0 = vld [vmem:[%s560_s1] sm:$0xff] (!%p115_p2)   ;;  %v486_v1 = vmov (!%p115_p2), 0   ;;  %v463_v2 = vld [vmem:[%s560_s1 + $0x8] sm:$0xff] (!%p115_p2)   ;;  %s390_s15 = sshll.u32 (!%p115_p2), %s385_s10, 2  ;;  %v464_v3 = vld [vmem:[%s560_s1 + $0x10] sm:$0xff] (!%p115_p2)   ;;  %vm249_vm0 = vcmask (!%p115_p2), 162816  }
   0x6   : > { %118 = sbr.rel (%p115_p2) target bundleno = 263 (0x107), region = 28  ;;  %260 = vmatprep.subr.bf16.mxu0 (!%p115_p2), %v486_v1  ;;  %433 = vmatprep.subr.bf16.mxu1 (!%p115_p2), %v486_v1  ;;  %p138_p3 = scmp.lt.s32.totalorder (!%p115_p2), %s390_s15, 7  ;;  %v465_v4 = vld [vmem:[%s560_s1 + $0x18] sm:$0xff] (!%p115_p2)   ;;  %v466_v7 = vld [vmem:[%s560_s1 + $0x20] sm:$0xff] (!%p115_p2)   ;;  %v467_v8 = vld [vmem:[%s560_s1 + $0x28] sm:$0xff] (!%p115_p2)   ;;  %vm256_vm1 = vcmask (!%p115_p2), 1041408  }
   0x7   : > { %261 = vmatpush1.bf16.msra.mxu0 (!%p115_p2), %v462_v0  ;;  %443 = vmatpush1.bf16.msra.mxu1 (!%p115_p2), %v462_v0  ;;  %v468_v9 = vld [vmem:[%s560_s1 + $0x30] sm:$0xff] (!%p115_p2)   ;;  %v469_v10 = vld [vmem:[%s560_s1 + $0x38] sm:$0xff] (!%p115_p2)   ;;  %v470_v11 = vld [vmem:[%s560_s1 + $0x40] sm:$0xff] (!%p115_p2)  }
   0x8   : > { %262 = vmatprep.subr.bf16.mxu0 (!%p115_p2), %v486_v1  ;;  %434 = vmatprep.subr.bf16.mxu1 (!%p115_p2), %v486_v1  ;;  %v471_v12 = vld [vmem:[%s560_s1 + $0x48] ss:$0 sps:$4 sm:$0x33] (!%p115_p2)  }
   0x9   : > { %v258_v13 = vsel (!%p115_p2), %vm256_vm1, %v471_v12, 0 }
   0xb   : > { %263 = vmatpush1.bf16.msra.mxu0 (!%p115_p2), %v463_v2  ;;  %444 = vmatpush1.bf16.msra.mxu1 (!%p115_p2), %v463_v2 }
   0xc   : > { %264 = vmatprep.subr.bf16.mxu0 (!%p115_p2), %v486_v1  ;;  %435 = vmatprep.subr.bf16.mxu1 (!%p115_p2), %v486_v1 }
   0xd   : > { %s563_s15 = smov (!%p138_p3, %s390_s15), 7 }
   0xe   : > { %s417_s18 = sshll.u32 %s563_s15, 3  ;;  %s394_s8 = sshll.u32 %s563_s15, 2 }
   0xf   : > { %s525_s21 = scalar_lea.vmem %s559_s0, %s417_s18  ;;  %265 = vmatpush1.bf16.msra.mxu0 %v464_v3  ;;  %445 = vmatpush1.bf16.msra.mxu1 %v464_v3  ;;  %s148_s12 = scalar_lea.vmem %s561_s2, %s394_s8 }
  0x10   : > { %v474_v5 = vld [vmem:[%s525_s21 + $0x4] ss:$8 sps:$4 sm:$0xff]   ;;  %266 = vmatprep.subr.bf16.mxu0 %v486_v1  ;;  %436 = vmatprep.subr.bf16.mxu1 %v486_v1  ;;  %v477_v6 = vld [vmem:[%s525_s21 + $0x14] ss:$8 sps:$4 sm:$0xff]   ;;  %v472_v14 = vld [vmem:[%s525_s21] ss:$8 sps:$4 sm:$0xff]  }
  0x11   : > { %409 = vmatprep.mubr.msk.bf16.mxu0 %vm249_vm0, %v474_v5  ;;  %410 = vmatprep.mubr.msk.bf16.mxu1 %vm249_vm0, %v477_v6  ;;  %v475_v15 = vld [vmem:[%s525_s21 + $0x10] ss:$8 sps:$4 sm:$0xff]  }
  0x13   : > { %267 = vmatpush1.bf16.msra.mxu0 %v465_v4  ;;  %446 = vmatpush1.bf16.msra.mxu1 %v465_v4 }
  0x14   : > { %268 = vmatprep.subr.bf16.mxu0 %v486_v1  ;;  %437 = vmatprep.subr.bf16.mxu1 %v486_v1 }
  0x17   : > { %269 = vmatpush1.bf16.msra.mxu0 %v466_v7  ;;  %447 = vmatpush1.bf16.msra.mxu1 %v466_v7 }
  0x18   : > { %270 = vmatprep.subr.bf16.mxu0 %v486_v1  ;;  %438 = vmatprep.subr.bf16.mxu1 %v486_v1 }
  0x1b   : > { %271 = vmatpush1.bf16.msra.mxu0 %v467_v8  ;;  %448 = vmatpush1.bf16.msra.mxu1 %v467_v8 }
  0x1c   : > { %272 = vmatprep.subr.bf16.mxu0 %v486_v1  ;;  %439 = vmatprep.subr.bf16.mxu1 %v486_v1 }
  0x1f   : > { %273 = vmatpush1.bf16.msra.mxu0 %v468_v9  ;;  %449 = vmatpush1.bf16.msra.mxu1 %v468_v9 }
  0x20   : > { %274 = vmatprep.subr.bf16.mxu0 %v486_v1  ;;  %440 = vmatprep.subr.bf16.mxu1 %v486_v1 }
  0x23   : > { %275 = vmatpush1.bf16.msra.mxu0 %v469_v10  ;;  %450 = vmatpush1.bf16.msra.mxu1 %v469_v10 }
  0x24   : > { %276 = vmatprep.subr.bf16.mxu0 %v486_v1  ;;  %441 = vmatprep.subr.bf16.mxu1 %v486_v1 }
  0x27   : > { %277 = vmatpush1.bf16.msra.mxu0 %v470_v11  ;;  %451 = vmatpush1.bf16.msra.mxu1 %v470_v11 }
  0x28   : > { %278 = vmatprep.subr.bf16.mxu0 %v486_v1  ;;  %442 = vmatprep.subr.bf16.mxu1 %v486_v1 }
  0x2b   : > { %279 = vmatpush1.bf16.msra.mxu0 %v258_v13  ;;  %452 = vmatpush1.bf16.msra.mxu1 %v258_v13 }
  0x2e   : > { %293 = vmatmul.mubr.bf16.vlgmr.msra.gmra.mrb[0].mxu0 %v472_v14  ;;  %301 = vmatmul.mubr.bf16.vlgmr.msra.gmra.mrb[0].mxu1 %v475_v15 }
 0x101   : > { %v294_v16 = vpop.f32.mrb[0].mxu0  ;;  %v302_v17 = vpop.f32.mrb[0].mxu1 }
 0x102   : > { %v296_v18 = vpop.f32.mrb[1].mxu0  ;;  %v304_v19 = vpop.f32.mrb[1].mxu1 }
 0x103   : > { %v297_v20 = vpop.f32.mrb[2].mxu0  ;;  %v305_v21 = vpop.f32.mrb[2].mxu1 }
 0x104   : > { %v425_v22 = vpack.c.bf16 %v297_v20, %v294_v16  ;;  %v430_v23 = vpack.c.bf16 %v305_v21, %v302_v17  ;;  %v299_v24 = vpop.f32.mrb[3].mxu0  ;;  %v307_v25 = vpop.f32.mrb[3].mxu1 }
 0x106   : > { %426 = vst [vmem:[%s148_s12] sm:$0xff] %v425_v22   ;;  %432 = vst [vmem:[%s148_s12 + $0x8] sm:$0xff] %v430_v23  }
 0x107 PF: > { %s12_s9 = sadd.s32 1, %s484_s9  }
 0x108   : > { %p9_p4 = scmp.ge.s32.totalorder %s12_s9, 4  }
 0x10a   :  { %11 = sbr.rel (!%p9_p4) target bundleno = 1 (0x1), region = 58 }

// kernel: fcn_forward.7
= control target key start
LH: loop header
LB: loop body
LE: loop exit
PB: predicated region body
PF: predicated region fallthrough
CT: control target
= control target key end

     0   :  { %s488_s12 = smov 0   ;;  %s519_s0 = inlined_call_operand.vmem [shape: bf16[128,3], index: 0, kind: input, shape index: {}]   ;;  %s520_s1 = inlined_call_operand.vmem [shape: bf16[3,16], index: 1, kind: input, shape index: {}]   ;;  %s521_s2 = inlined_call_operand.vmem [shape: f32[1,16], index: 2, kind: input, shape index: {}]   ;;  %s522_s3 = inlined_call_operand.vmem [shape: bf16[128,16], index: 3, kind: output, shape index: {}]  }
   0x1 LB: > { %s393_s13 = sadd.s32 4294967295, %s465_s12   ;;  %p397_p0 = scmp.ge.s32.totalorder %s465_s12, 1  ;;  %s465_s12 = sphi %s488_s12, %s13_s12  }
   0x2   : > { %p138_p1 = scmp.lt.s32.totalorder %s465_s12, 3 }
   0x4   : > { %p139_p2 = pnand %p397_p0, %p138_p1 }
   0x5   : > { %v183_v0 = vld [vmem:[%s520_s1] sm:$0x3] (!%p139_p2)  ;;  %vm224_vm0 = vcmask (!%p139_p2), 1040384   ;;  %vm225_vm1 = vcmask (!%p139_p2), 1041408   ;;  %s398_s16 = sshll.u32 (!%p139_p2), %s393_s13, 3  ;;  %v467_v1 = vmov (!%p139_p2), 65535  }
   0x6   : > { %142 = sbr.rel (%p139_p2) target bundleno = 238 (0xee), region = 32  ;;  %v226_v2 = vsel (!%p139_p2), %vm224_vm0, 4294967295, %v467_v1  ;;  %p163_p3 = scmp.lt.s32.totalorder (!%p139_p2), %s398_s16, 15  ;;  %vm211_vm2 = vcmask (!%p139_p2), 23552   ;;  %v402_v9 = vld [vmem:[%s521_s2] ss:$0 sm:$0xff] (!%p139_p2) }
   0x7   : > { %v227_v3 = vsel (!%p139_p2), %vm225_vm1, %v226_v2, 0  ;;  %vm328_vm3 = vcmask (!%p139_p2), 125952  }
   0x8   : > { %v229_v4 = vand.u32 (!%p139_p2), %v227_v3, %v183_v0 }
   0xa   : > { %434 = vmatprep.subr.bf16.mxu0 (!%p139_p2), %v229_v4  ;;  %444 = vmatprep.subr.bf16.mxu1 (!%p139_p2), %v229_v4 }
   0xb   : > { %435 = vmatpush3.bf16.msra.mxu0 (!%p139_p2), %v229_v4  ;;  %445 = vmatpush3.bf16.msra.mxu1 (!%p139_p2), %v229_v4 }
   0xd   : > { %s524_s16 = smov (!%p163_p3, %s398_s16), 15 }
   0xe   : > { %s399_s17 = sshll.u32 %s524_s16, 2 }
   0xf   : > { %s166_s20 = scalar_lea.vmem %s519_s0, %s399_s17  ;;  %s172_s25 = scalar_lea.vmem %s522_s3, %s399_s17 }
  0x10   : > { %v455_v5 = vld [vmem:[%s166_s20] sm:$0xff]   ;;  %v456_v6 = vld [vmem:[%s166_s20 + $0x10] sm:$0xff]   ;;  %v457_v7 = vld [vmem:[%s166_s20 + $0x8] sm:$0xff]  }
  0x11   : > { %436 = vmatprep.mubr.msk.bf16.mxu0 %vm211_vm2, %v455_v5  ;;  %440 = vmatprep.mubr.msk.bf16.mxu1 %vm211_vm2, %v456_v6  ;;  %v458_v8 = vld [vmem:[%s166_s20 + $0x18] sm:$0xff]  }
  0x12   : > { %437 = vmatmul.mubr.msk.bf16.vlgmr.msra.gmra.mrb[0].mxu0 %vm211_vm2, %v457_v7  ;;  %441 = vmatmul.mubr.msk.bf16.vlgmr.msra.gmra.mrb[0].mxu1 %vm211_vm2, %v458_v8 }
  0xe5   : > { %v438_v10 = vpop.f32.mrb[0].mxu0  ;;  %v442_v12 = vpop.f32.mrb[0].mxu1 }
  0xe6   : > { %v274_v11 = vadd.f32 %v438_v10, %v402_v9  ;;  %v265_v13 = vpop.f32.mrb[1].mxu0  ;;  %v290_v14 = vadd.f32 %v442_v12, %v402_v9  ;;  %v281_v16 = vpop.f32.mrb[1].mxu1 }
  0xe7   : > { %v266_v15 = vadd.f32 %v402_v9, %v265_v13  ;;  %v439_v17 = vpop.f32.mrb[2].mxu0  ;;  %v282_v19 = vadd.f32 %v402_v9, %v281_v16  ;;  %v443_v21 = vpop.f32.mrb[2].mxu1 }
  0xe8   : > { %v423_v18 = vpack.c.bf16 %v274_v11, %v274_v11  ;;  %v277_v20 = vadd.f32 %v439_v17, %v402_v9  ;;  %v268_v22 = vpop.f32.mrb[3].mxu0  ;;  %v427_v23 = vpack.c.bf16 %v290_v14, %v290_v14  ;;  %v293_v25 = vadd.f32 %v443_v21, %v402_v9  ;;  %v284_v27 = vpop.f32.mrb[3].mxu1 }
  0xe9   : > { %v421_v24 = vpack.c.bf16 %v266_v15, %v266_v15  ;;  %v269_v26 = vadd.f32 %v402_v9, %v268_v22  ;;  %v425_v28 = vpack.c.bf16 %v282_v19, %v282_v19  ;;  %v285_v30 = vadd.f32 %v402_v9, %v284_v27 }
  0xea   : > { %331 = vst.msk [vmem:[%s172_s25 + $0x8] sm:$0xf] %vm328_vm3, %v423_v18  ;;  %v424_v29 = vpack.c.bf16 %v277_v20, %v277_v20  ;;  %335 = vst.msk [vmem:[%s172_s25 + $0x18] sm:$0xf] %vm328_vm3, %v427_v23  ;;  %v428_v31 = vpack.c.bf16 %v293_v25, %v293_v25 }
  0xeb   : > { %329 = vst.msk [vmem:[%s172_s25] sm:$0xf] %vm328_vm3, %v421_v24  ;;  %v422_v32 = vpack.c.bf16 %v269_v26, %v269_v26  ;;  %333 = vst.msk [vmem:[%s172_s25 + $0x10] sm:$0xf] %vm328_vm3, %v425_v28  ;;  %v426_v33 = vpack.c.bf16 %v285_v30, %v285_v30 }
  0xec   : > { %332 = vst.msk [vmem:[%s172_s25 + $0xc] sm:$0xf] %vm328_vm3, %v424_v29  ;;  %336 = vst.msk [vmem:[%s172_s25 + $0x1c] sm:$0xf] %vm328_vm3, %v428_v31 }
  0xed   : > { %330 = vst.msk [vmem:[%s172_s25 + $0x4] sm:$0xf] %vm328_vm3, %v422_v32  ;;  %334 = vst.msk [vmem:[%s172_s25 + $0x14] sm:$0xf] %vm328_vm3, %v426_v33 }
  0xee PF: > { %s13_s12 = sadd.s32 1, %s465_s12  }
  0xef   : > { %p10_p4 = scmp.ge.s32.totalorder %s13_s12, 4  }
  0xf1   :  { %12 = sbr.rel (!%p10_p4) target bundleno = 1 (0x1), region = 62 }

// kernel: fcn_forward.12
= control target key start
LH: loop header
LB: loop body
LE: loop exit
PB: predicated region body
PF: predicated region fallthrough
CT: control target
= control target key end

     0   :  { %s556_s9 = smov 0   ;;  %s642_s0 = inlined_call_operand.vmem [shape: bf16[176,84], index: 0, kind: input, shape index: {}]   ;;  %s643_s1 = inlined_call_operand.vmem [shape: bf16[84,256], index: 1, kind: input, shape index: {}]   ;;  %s644_s2 = inlined_call_operand.vmem [shape: f32[176,256], index: 2, kind: output, shape index: {}]  }
   0x1 LB: > { %s452_s10 = sadd.s32 4294967295, %s538_s9   ;;  %p456_p0 = scmp.ge.s32.totalorder %s538_s9, 1  ;;  %s538_s9 = sphi %s556_s9, %s12_s9  }
   0x2   : > { %p113_p1 = scmp.lt.s32.totalorder %s538_s9, 3 }
   0x4   : > { %p114_p2 = pnand %p456_p0, %p113_p1 }
   0x5   : > { %v509_v0 = vld [vmem:[%s643_s1 + $0x4] ss:$8 sps:$4 sm:$0xff] (!%p114_p2)   ;;  %v511_v1 = vld [vmem:[%s643_s1] ss:$8 sps:$4 sm:$0xff] (!%p114_p2)   ;;  %v540_v2 = vmov (!%p114_p2), 0   ;;  %s136_s15 = smul.u32 (!%p114_p2), 11, %s452_s10 }
   0x6   : > { %117 = sbr.rel (%p114_p2) target bundleno = 263 (0x107), region = 28  ;;  %313 = vmatprep.mubr.bf16.mxu0 (!%p114_p2), %v540_v2  ;;  %343 = vmatprep.mubr.bf16.mxu1 (!%p114_p2), %v540_v2  ;;  %v512_v3 = vld [vmem:[%s643_s1 + $0x14] ss:$8 sps:$4 sm:$0xff] (!%p114_p2)   ;;  %v514_v4 = vld [vmem:[%s643_s1 + $0x10] ss:$8 sps:$4 sm:$0xff] (!%p114_p2)   ;;  %vm274_vm0 = vcmask (!%p114_p2), 1041408  }
   0x7   : > { %281 = vmatprep.subr.bf16.mxu0 (!%p114_p2), %v509_v0  ;;  %488 = vmatprep.subr.bf16.mxu1 (!%p114_p2), %v509_v0  ;;  %p137_p3 = scmp.lt.s32.totalorder (!%p114_p2), %s136_s15, 21  ;;  %v515_v5 = vld [vmem:[%s643_s1 + $0x24] ss:$8 sps:$4 sm:$0xff] (!%p114_p2)   ;;  %v517_v6 = vld [vmem:[%s643_s1 + $0x20] ss:$8 sps:$4 sm:$0xff] (!%p114_p2)   ;;  %vm255_vm1 = vcmask (!%p114_p2), 687104  }
   0x8   : > { %282 = vmatpush1.bf16.msra.mxu0 (!%p114_p2), %v511_v1  ;;  %494 = vmatpush1.bf16.msra.mxu1 (!%p114_p2), %v511_v1  ;;  %v518_v7 = vld [vmem:[%s643_s1 + $0x34] ss:$8 sps:$4 sm:$0xff] (!%p114_p2)   ;;  %v520_v8 = vld [vmem:[%s643_s1 + $0x30] ss:$8 sps:$4 sm:$0xff] (!%p114_p2)   ;;  %v521_v9 = vld [vmem:[%s643_s1 + $0x44] ss:$8 sps:$4 sm:$0xff] (!%p114_p2)  }
   0x9   : > { %283 = vmatprep.subr.bf16.mxu0 (!%p114_p2), %v512_v3  ;;  %489 = vmatprep.subr.bf16.mxu1 (!%p114_p2), %v512_v3  ;;  %v171_v10 = vld [vmem:[%s643_s1 + $0x50] sm:$0x33] (!%p114_p2)  ;;  %v523_v11 = vld [vmem:[%s643_s1 + $0x40] ss:$8 sps:$4 sm:$0xff] (!%p114_p2)  }
   0xa   : > { %v477_v12 = vcombine.high (!%p114_p2), %v171_v10, %v171_v10  ;;  %v476_v13 = vcombine.low (!%p114_p2), %v171_v10, %v171_v10 }
   0xc   : > { %284 = vmatpush1.bf16.msra.mxu0 (!%p114_p2), %v514_v4  ;;  %495 = vmatpush1.bf16.msra.mxu1 (!%p114_p2), %v514_v4  ;;  %v276_v14 = vsel (!%p114_p2), %vm274_vm0, %v476_v13, 0 }
   0xd   : > { %s646_s15 = smov (!%p137_p3, %s136_s15), 21  ;;  %285 = vmatprep.subr.bf16.mxu0 %v515_v5  ;;  %490 = vmatprep.subr.bf16.mxu1 %v515_v5 }
   0xe   : > { %s457_s24 = sshll.u32 %s646_s15, 2  ;;  %s487_s11 = sshll.u32 %s646_s15, 4 }
   0xf   : > { %s591_s29 = scalar_lea.vmem %s642_s0, %s457_s24  ;;  %s615_s14 = scalar_lea.vmem %s644_s2, %s487_s11 }
  0x10   : > { %286 = vmatpush1.bf16.msra.mxu0 %v517_v6  ;;  %496 = vmatpush1.bf16.msra.mxu1 %v517_v6  ;;  %v526_v15 = vld [vmem:[%s591_s29] sm:$0xff]   ;;  %v527_v16 = vld [vmem:[%s591_s29 + $0x18] sm:$0xff]   ;;  %v528_v17 = vld [vmem:[%s591_s29 + $0x8] sm:$0xff]  }
  0x11   : > { %287 = vmatprep.subr.bf16.mxu0 %v518_v7  ;;  %491 = vmatprep.subr.bf16.mxu1 %v518_v7  ;;  %v529_v18 = vld [vmem:[%s591_s29 + $0x20] sm:$0xff]   ;;  %v530_v19 = vld [vmem:[%s591_s29 + $0x10] sm:$0xff]   ;;  %v531_v20 = vld [vmem:[%s591_s29 + $0x28] ss:$0 sps:$4 sm:$0xff]  }
  0x14   : > { %288 = vmatpush1.bf16.msra.mxu0 %v520_v8  ;;  %497 = vmatpush1.bf16.msra.mxu1 %v520_v8 }
  0x15   : > { %289 = vmatprep.subr.bf16.mxu0 %v521_v9  ;;  %492 = vmatprep.subr.bf16.mxu1 %v521_v9 }
  0x18   : > { %290 = vmatpush1.bf16.msra.mxu0 %v523_v11  ;;  %498 = vmatpush1.bf16.msra.mxu1 %v523_v11 }
  0x19   : > { %478 = vmatprep.subr.msk.bf16.mxu0 %vm274_vm0, %v477_v12  ;;  %493 = vmatprep.subr.msk.bf16.mxu1 %vm274_vm0, %v477_v12 }
  0x1c   : > { %292 = vmatpush1.bf16.msra.mxu0 %v276_v14  ;;  %499 = vmatpush1.bf16.msra.mxu1 %v276_v14 }
  0x1f   : > { %479 = vmatmul.mubr.msk.bf16.vlgmr.msra.gmra.mrb[0].mxu0 %vm255_vm1, %v526_v15  ;;  %482 = vmatmul.mubr.msk.bf16.vlgmr.msra.gmra.mrb[0].mxu1 %vm255_vm1, %v527_v16 }
  0x20   : > { %323 = vmatprep.mubr.bf16.mxu0 %v540_v2  ;;  %353 = vmatprep.mubr.bf16.mxu1 %v540_v2 }
  0x27   : > { %480 = vmatmul.mubr.msk.bf16.gmra.mrb[4].mxu0 %vm255_vm1, %v528_v17  ;;  %483 = vmatmul.mubr.msk.bf16.gmra.mrb[4].mxu1 %vm255_vm1, %v529_v18 }
  0x28   : > { %333 = vmatprep.mubr.bf16.mxu0 %v540_v2  ;;  %363 = vmatprep.mubr.bf16.mxu1 %v540_v2 }
  0x2f   : > { %481 = vmatmul.mubr.msk.bf16.gmra.mrb[8].mxu0 %vm255_vm1, %v530_v19  ;;  %484 = vmatmul.mubr.msk.bf16.gmra.mrb[8].mxu1 %vm255_vm1, %v531_v20 }
  0xf2   : > { %v315_v21 = vpop.f32.mrb[0].mxu0  ;;  %v345_v22 = vpop.f32.mrb[0].mxu1 }
  0xf3   : > { %372 = vst [vmem:[%s615_s14] sm:$0xff] %v315_v21  ;;  %384 = vst [vmem:[%s615_s14 + $0x60] sm:$0xff] %v345_v22  ;;  %v317_v23 = vpop.f32.mrb[1].mxu0  ;;  %v347_v24 = vpop.f32.mrb[1].mxu1 }
  0xf4   : > { %373 = vst [vmem:[%s615_s14 + $0x8] sm:$0xff] %v317_v23  ;;  %385 = vst [vmem:[%s615_s14 + $0x68] sm:$0xff] %v347_v24  ;;  %v319_v25 = vpop.f32.mrb[2].mxu0  ;;  %v349_v26 = vpop.f32.mrb[2].mxu1 }
  0xf5   : > { %374 = vst [vmem:[%s615_s14 + $0x10] sm:$0xff] %v319_v25  ;;  %386 = vst [vmem:[%s615_s14 + $0x70] sm:$0xff] %v349_v26  ;;  %v321_v27 = vpop.f32.mrb[3].mxu0  ;;  %v351_v28 = vpop.f32.mrb[3].mxu1 }
  0xf6   : > { %375 = vst [vmem:[%s615_s14 + $0x18] sm:$0xff] %v321_v27  ;;  %387 = vst [vmem:[%s615_s14 + $0x78] sm:$0xff] %v351_v28 }
  0xfa   : > { %v325_v29 = vpop.f32.mrb[4].mxu0  ;;  %v355_v30 = vpop.f32.mrb[4].mxu1 }
  0xfb   : > { %376 = vst [vmem:[%s615_s14 + $0x20] sm:$0xff] %v325_v29  ;;  %388 = vst [vmem:[%s615_s14 + $0x80] sm:$0xff] %v355_v30  ;;  %v327_v31 = vpop.f32.mrb[5].mxu0  ;;  %v357_v32 = vpop.f32.mrb[5].mxu1 }
  0xfc   : > { %377 = vst [vmem:[%s615_s14 + $0x28] sm:$0xff] %v327_v31  ;;  %389 = vst [vmem:[%s615_s14 + $0x88] sm:$0xff] %v357_v32  ;;  %v329_v33 = vpop.f32.mrb[6].mxu0  ;;  %v359_v34 = vpop.f32.mrb[6].mxu1 }
  0xfd   : > { %378 = vst [vmem:[%s615_s14 + $0x30] sm:$0xff] %v329_v33  ;;  %390 = vst [vmem:[%s615_s14 + $0x90] sm:$0xff] %v359_v34  ;;  %v331_v35 = vpop.f32.mrb[7].mxu0  ;;  %v361_v36 = vpop.f32.mrb[7].mxu1 }
  0xfe   : > { %379 = vst [vmem:[%s615_s14 + $0x38] sm:$0xff] %v331_v35  ;;  %391 = vst [vmem:[%s615_s14 + $0x98] sm:$0xff] %v361_v36 }
 0x102   : > { %v335_v37 = vpop.f32.mrb[8].mxu0  ;;  %v365_v38 = vpop.f32.mrb[8].mxu1 }
 0x103   : > { %380 = vst [vmem:[%s615_s14 + $0x40] sm:$0xff] %v335_v37  ;;  %392 = vst [vmem:[%s615_s14 + $0xa0] sm:$0xff] %v365_v38  ;;  %v337_v39 = vpop.f32.mrb[9].mxu0  ;;  %v367_v40 = vpop.f32.mrb[9].mxu1 }
 0x104   : > { %381 = vst [vmem:[%s615_s14 + $0x48] sm:$0xff] %v337_v39  ;;  %393 = vst [vmem:[%s615_s14 + $0xa8] sm:$0xff] %v367_v40  ;;  %v339_v41 = vpop.f32.mrb[10].mxu0  ;;  %v369_v42 = vpop.f32.mrb[10].mxu1 }
 0x105   : > { %382 = vst [vmem:[%s615_s14 + $0x50] sm:$0xff] %v339_v41  ;;  %v341_v43 = vpop.f32.mrb[11].mxu0  ;;  %v370_v44 = vpop.f32.mrb[11].mxu1 }
 0x106   : > { %383 = vst [vmem:[%s615_s14 + $0x58] sm:$0xff] %v341_v43 }
 0x107 PF: > { %s12_s9 = sadd.s32 1, %s538_s9  }
 0x108   : > { %p9_p4 = scmp.ge.s32.totalorder %s12_s9, 4  }
 0x10a   :  { %11 = sbr.rel (!%p9_p4) target bundleno = 1 (0x1), region = 58 }

// kernel: fcn_forward.13
= control target key start
LH: loop header
LB: loop body
LE: loop exit
PB: predicated region body
PF: predicated region fallthrough
CT: control target
= control target key end

     0   :  { %10 = vsyncpa [#allocation3], 0  ;;  %s2896_s0 = inlined_call_operand.vmem [shape: f32[2,4,4096], index: 0, kind: input, shape index: {}]   ;;  %s2897_s1 = inlined_call_operand.vmem [shape: s32[2,1,4096], index: 1, kind: input, shape index: {}]   ;;  %s2898_s2 = inlined_call_operand.vmem [shape: f32[1,4,1], index: 2, kind: input, shape index: {}]   ;;  %s2899_s3 = inlined_call_operand.hbm [shape: f32[1,1], index: 3, kind: output, shape index: {0}]   ;;  %s2900_s4 = inlined_call_operand.hbm [shape: f32[1,1], index: 4, kind: output, shape index: {1}]  }
   0x1   :  { %11 = vsyncpa [#allocation5], 0  ;;  %s1956_s15 = smov 0   ;;  %s1958_s16 = smov 0  }
   0x2   :  { %s1960_s17 = smov 0   ;;  %s1962_s18 = smov 0  }
   0x3   :  { %s1964_s19 = smov 0  }
   0x4 LB: > { %s1672_s20 = sadd.s32 4294967295, %s1923_s19   ;;  %s26_s21 = sadd.s32 1, %s1915_s17  ;;  %s1923_s19 = sphi %s1964_s19, %s17_s19   ;;  %s1919_s18 = sphi %s1962_s18, %s3083_s18   ;;  %s1915_s17 = sphi %s1960_s17, %s3082_s17   ;;  %s1911_s16 = sphi %s1958_s16, %s3081_s16   ;;  %s1907_s15 = sphi %s1956_s15, %s3080_s15  }
   0x5   : > { %p27_p0 = scmp.ge.s32.totalorder %s26_s21, 2  ;;  %s29_s22 = sadd.s32 1, %s1919_s18 }
   0x6   : > { %p1675_p1 = scmp.ge.s32.totalorder %s1923_s19, 1  ;;  %p192_p2 = scmp.lt.s32.totalorder %s1923_s19, 5 }
   0x7   : > { %s3085_s21 = smov (%p27_p0, %s26_s21), 0  ;;  %s3087_s22 = smov (!%p27_p0, %s29_s22), %s1919_s18 }
   0x8   : > { %p193_p3 = pnand %p1675_p1, %p192_p2  ;;  %p31_p4 = scmp.ge.s32.totalorder %s3087_s22, 2 }
   0xa   : > { %s3089_s22 = smov (%p31_p4, %s3087_s22), 0  ;;  %196 = sbr.rel (%p193_p3) target bundleno = 506 (0x1fa), region = 32 }
  0x11   : > { %s1676_s23 = sshll.u32 %s1907_s15, 4  ;;  %p226_p5 = scmp.lt.s32.totalorder %s1911_s16, 1 }
  0x12   : > { %p228_p6 = scmp.lt.s32.totalorder %s1676_s23, 31  ;;  %s244_s24 = sadd.s32 %s1907_s15, %s1911_s16 }
  0x13   : > { %s3091_s16 = smov (!%p226_p5, %s1911_s16), 1  ;;  %p1681_p7 = scmp.ne.s32.totalorder %s244_s24, 0 }
  0x14   : > { %s3093_s23 = smov (!%p228_p6, %s1676_s23), 31  ;;  %s1677_s25 = sshll.u32 %s3091_s16, 5  ;;  %vm249_vm0 = vcmask (!%p1681_p7), 0   ;;  %v1925_v0 = vmov (!%p1681_p7), 0.0  }
  0x15   : > { %s231_s26 = sadd.s32 %s1677_s25, %s3093_s23  ;;  %248 = sbr.rel (%p1681_p7) target bundleno = 28 (0x1c), region = 36  ;;  %250 = vst.msk [vmem:[#allocation2] sm:$0x1] (!%p1681_p7), %vm249_vm0, %v1925_v0  ;;  %251 = vst.msk [vmem:[#allocation4] sm:$0x1] (!%p1681_p7), %vm249_vm0, %v1925_v0 }
  0x16   : > { %s1678_s27 = sshll.u32 %s231_s26, 2  ;;  %s1990_s30 = scalar_lea.vmem %s2897_s1, %s231_s26 }
  0x17   : > { %s1995_s7 = scalar_lea.vmem %s2896_s0, %s1678_s27 }
  0x1c PF: > { %v929_v1 = vld [vmem:[%s2898_s2] sm:$0xf]  ;;  %v639_v2 = vlaneseq  ;;  %v1926_v3 = vmov 0   ;;  %vm286_vm1 = vcmask 1043456   ;;  %v2015_v9 = vld [vmem:[%s1995_s7 + $0x8] sm:$0xff]  ;;  %v2018_v10 = vld [vmem:[%s1995_s7 + $0x10] sm:$0xff] }
  0x1d   : > { %1766 = vset.pattern.permute.xlu0 %v1926_v3  ;;  %v2003_v5 = vld [vmem:[%s1990_s30] sm:$0xff]  ;;  %v2030_v14 = vld [vmem:[%s1995_s7 + $0x18] sm:$0xff]  ;;  %v2036_v16 = vld [vmem:[%s1995_s7 + $0x28] sm:$0xff]  ;;  %v271_v24 = vcombine.high %v2015_v9, %v2015_v9  ;;  %v272_v25 = vcombine.high %v2018_v10, %v2018_v10  ;;  %v2901_v47 = vmov 0.0   ;;  %v301_v54 = vsel %vm286_vm1, %v2015_v9, -inf  ;;  %s1929_s10 = smov [#allocation2]  }
  0x1e   : > { %932 = vperm.xlu0 %1766, %v929_v1   ;;  %v2000_v4 = vshrl.u32 %v639_v2, 7  ;;  %v2012_v8 = vld [vmem:[%s1995_s7] sm:$0xff]  ;;  %v2048_v20 = vld [vmem:[%s1990_s30 + $0x8] sm:$0xff]  ;;  %v273_v26 = vcombine.high %v2030_v14, %v2030_v14  ;;  %v275_v28 = vcombine.high %v2036_v16, %v2036_v16  ;;  %v315_v56 = vsel %vm286_vm1, %v2018_v10, -inf  ;;  %s1578_s11 = sshll.u32 %s1929_s10, 4  ;;  %s1930_s13 = smov [#allocation4]   ;;  %s1579_s11 = int_to_ptr.vmem [resolvable:$true] %s1578_s11 }
  0x1f   : > { %v2033_v15 = vld [vmem:[%s1995_s7 + $0x20] sm:$0xff]  ;;  %v270_v23 = vcombine.high %v2012_v8, %v2012_v8  ;;  %v287_v32 = vsel %vm286_vm1, %v2012_v8, -inf  ;;  %v308_v55 = vsel %vm286_vm1, %v271_v24, -inf  ;;  %v302_v58 = vrot.slane %v301_v54, 4  ;;  %s1589_s14 = sshll.u32 %s1930_s13, 4  ;;  %p2825_p8 = scmp.eq.s32.totalorder %s1672_s20, 3  ;;  %s2829_s14 = int_to_ptr.vmem [resolvable:$true] %s1589_s14 }
  0x20   : > { %v2006_v6 = vsub.s32 0, %v2000_v4  ;;  %v2009_v7 = vsub.s32 1, %v2000_v4  ;;  %v2021_v11 = vsub.s32 2, %v2000_v4  ;;  %v2024_v12 = vsub.s32 3, %v2000_v4  ;;  %s1825_s23 = scalar_lea.vmem %s1579_s11, 16  ;;  %s1831_s24 = scalar_lea.vmem %s1579_s11, 32 }
  0x21   : > { %v2027_v13 = vsub.s32 4, %v2000_v4  ;;  %v2039_v17 = vsub.s32 5, %v2000_v4  ;;  %v2042_v18 = vsub.s32 6, %v2000_v4  ;;  %v2045_v19 = vsub.s32 7, %v2000_v4  ;;  %p1826_p9 = scmp.ne.s32.totalorder %s1579_s11, %s1825_s23  ;;  %p1832_p12 = scmp.lt.s32.totalorder %s1579_s11, %s1579_s11 }
  0x22   : > { %2944 = vst [vmem:[#allocation8_spill] sm:$0xff] %v2006_v6  ;;  %2945 = vst [vmem:[#allocation9_spill] sm:$0xff] %v2009_v7  ;;  %v644_v21 = vrot.slane %v2003_v5, %v2006_v6  ;;  %v648_v22 = vrot.slane %v2003_v5, %v2009_v7  ;;  %v274_v27 = vcombine.high %v2033_v15, %v2033_v15  ;;  %v288_v50 = vrot.slane %v287_v32, 4  ;;  %p1833_p13 = scmp.lt.s32.totalorder %s1831_s24, %s1825_s23 }
  0x23   : > { %2946 = vst [vmem:[#allocation10_spill] sm:$0xff] %v2021_v11  ;;  %2947 = vst [vmem:[#allocation11_spill] sm:$0xff] %v2024_v12  ;;  %v652_v29 = vrot.slane %v2003_v5, %v2021_v11  ;;  %v656_v30 = vrot.slane %v2003_v5, %v2024_v12  ;;  %v660_v31 = vrot.slane %v2003_v5, %v2027_v13  ;;  %v294_v51 = vsel %vm286_vm1, %v270_v23, -inf  ;;  %p1827_p10 = pnand %p1826_p9, %p2825_p8 }
  0x24   : > { %2948 = vst [vmem:[#allocation12_spill] sm:$0xff] %v2027_v13  ;;  %2949 = vst [vmem:[#allocation13_spill] sm:$0xff] %v2039_v17  ;;  %v664_v33 = vrot.slane %v2003_v5, %v2039_v17  ;;  %v668_v34 = vrot.slane %v2003_v5, %v2042_v18  ;;  %v672_v35 = vrot.slane %v2003_v5, %v2045_v19  ;;  %v295_v53 = vrot.slane %v294_v51, 4  ;;  %p1834_p0 = por %p1833_p13, %p1832_p12 }
  0x25   : > { %2950 = vst [vmem:[#allocation14_spill] sm:$0xff] %v2042_v18  ;;  %2951 = vst [vmem:[#allocation15_spill] sm:$0xff] %v2045_v19  ;;  %v676_v36 = vrot.slane %v2048_v20, %v2006_v6  ;;  %v680_v37 = vrot.slane %v2048_v20, %v2009_v7  ;;  %v684_v38 = vrot.slane %v2048_v20, %v2021_v11  ;;  %v309_v59 = vrot.slane %v308_v55, 4  ;;  %p1828_p11 = pneg %p1827_p10 }
  0x26   : > { %vm705_vm2 = vcmp.eq.s32.totalorder %v2000_v4, %v644_v21  ;;  %vm706_vm3 = vcmp.eq.s32.totalorder %v2000_v4, %v648_v22  ;;  %v688_v39 = vrot.slane %v2048_v20, %v2024_v12  ;;  %v692_v40 = vrot.slane %v2048_v20, %v2027_v13 }
  0x27   : > { %vm2099_vm4 = vcmp.eq.s32.totalorder %v2000_v4, %v652_v29  ;;  %vm2104_vm5 = vcmp.eq.s32.totalorder %v2000_v4, %v656_v30  ;;  %vm2109_vm6 = vcmp.eq.s32.totalorder %v2000_v4, %v660_v31  ;;  %v2114_v48 = vsel %vm705_vm2, 1.0, %v2901_v47  ;;  %p1835_p1 = pnand %p1834_p0, %p1828_p11 }
  0x28   : > { %2958 = vst [vmem:[#allocation16_spill] sm:$0xff] %v2114_v48  ;;  %v2117_v49 = vsel %vm706_vm3, 1.0, %v2901_v47  ;;  %vm2121_vm7 = vcmp.eq.s32.totalorder %v2000_v4, %v664_v33  ;;  %v289_v57 = vmax.f32 %v287_v32, %v288_v50  ;;  %v316_v60 = vrot.slane %v315_v56, 4 }
  0x29   : > { %2959 = vst [vmem:[#allocation17_spill] sm:$0xff] %v2117_v49  ;;  %v296_v61 = vmax.f32 %v294_v51, %v295_v53  ;;  %v322_v62 = vsel %vm286_vm1, %v272_v25, -inf  ;;  %v329_v63 = vsel %vm286_vm1, %v2030_v14, -inf  ;;  %v336_v0 = vsel %vm286_vm1, %v273_v26, -inf }
  0x2a   : > { %v290_v1 = vrot.slane %v289_v57, 2  ;;  %v303_v2 = vmax.f32 %v301_v54, %v302_v58  ;;  %v310_v3 = vmax.f32 %v308_v55, %v309_v59  ;;  %v317_v21 = vmax.f32 %v315_v56, %v316_v60  ;;  %v2140_v58 = vld [vmem:[%s1995_s7 + $0x30] sm:$0xff] }
  0x2b   : > { %v297_v22 = vrot.slane %v296_v61, 2  ;;  %v323_v23 = vrot.slane %v322_v62, 4  ;;  %v330_v24 = vrot.slane %v329_v63, 4  ;;  %v337_v29 = vrot.slane %v336_v0, 4 }
  0x2c   : > { %v291_v30 = vmax.f32 %v289_v57, %v290_v1  ;;  %v304_v31 = vrot.slane %v303_v2, 2  ;;  %v311_v32 = vrot.slane %v310_v3, 2  ;;  %v318_v33 = vrot.slane %v317_v21, 2 }
  0x2d   : > { %v298_v25 = vmax.f32 %v296_v61, %v297_v22  ;;  %v324_v50 = vmax.f32 %v322_v62, %v323_v23  ;;  %v331_v51 = vmax.f32 %v329_v63, %v330_v24  ;;  %v338_v53 = vmax.f32 %v336_v0, %v337_v29  ;;  %v2153_v62 = vld [vmem:[%s1995_s7 + $0x38] sm:$0xff] }
  0x2e   : > { %v2137_v26 = vsel %vm2099_vm4, 1.0, %v2901_v47  ;;  %v305_v54 = vmax.f32 %v303_v2, %v304_v31  ;;  %v312_v55 = vmax.f32 %v310_v3, %v311_v32  ;;  %v319_v56 = vmax.f32 %v317_v21, %v318_v33 }
  0x2f   : > { %2962 = vst [vmem:[#allocation18_spill] sm:$0xff] %v2137_v26  ;;  %v292_v59 = vrot.slane %v291_v30, 1  ;;  %v325_v57 = vrot.slane %v324_v50, 2  ;;  %v332_v60 = vrot.slane %v331_v51, 2  ;;  %v339_v1 = vrot.slane %v338_v53, 2 }
  0x30   : > { %v2145_v61 = vsel %vm2104_vm5, 1.0, %v2901_v47  ;;  %v2150_v44 = vsel %vm2109_vm6, 1.0, %v2901_v47  ;;  %v299_v63 = vrot.slane %v298_v25, 1  ;;  %v306_v0 = vrot.slane %v305_v54, 1 }
  0x31   : > { %2963 = vst [vmem:[#allocation19_spill] sm:$0xff] %v2145_v61  ;;  %2964 = vst [vmem:[#allocation20_spill] sm:$0xff] %v2150_v44  ;;  %v313_v2 = vrot.slane %v312_v55, 1  ;;  %v326_v3 = vmax.f32 %v324_v50, %v325_v57  ;;  %v333_v21 = vmax.f32 %v331_v51, %v332_v60  ;;  %v340_v22 = vmax.f32 %v338_v53, %v339_v1 }
  0x32   : > { %v2158_v23 = vsel %vm2121_vm7, 1.0, %v2901_v47  ;;  %v276_v45 = vcombine.high %v2140_v58, %v2140_v58  ;;  %v320_v24 = vrot.slane %v319_v56, 1  ;;  %v343_v46 = vsel %vm286_vm1, %v2033_v15, -inf }
  0x33   : > { %2965 = vst [vmem:[#allocation21_spill] sm:$0xff] %v2158_v23  ;;  %v277_v29 = vcombine.high %v2153_v62, %v2153_v62  ;;  %v2166_v31 = vmax.f32 %v291_v30, %v292_v59  ;;  %v327_v32 = vrot.slane %v326_v3, 1  ;;  %v334_v33 = vrot.slane %v333_v21, 1 }
  0x34   : > { %v341_v50 = vrot.slane %v340_v22, 1  ;;  %v344_v51 = vrot.slane %v343_v46, 4  ;;  %v350_v52 = vsel %vm286_vm1, %v274_v27, -inf  ;;  %v357_v53 = vsel %vm286_vm1, %v2036_v16, -inf }
  0x35   : > { %v2174_v57 = vmax.f32 %v298_v25, %v299_v63  ;;  %v2176_v60 = vmax.f32 %v305_v54, %v306_v0  ;;  %v2178_v1 = vmax.f32 %v312_v55, %v313_v2  ;;  %v351_v30 = vrot.slane %v350_v52, 4 }
  0x36   : > { %vm2184_vm8 = vcmp.eq.s32.totalorder %v2000_v4, %v668_v34  ;;  %v2188_v47 = vmax.f32 %v319_v56, %v320_v24  ;;  %v2190_v27 = vmax.f32 %v326_v3, %v327_v32  ;;  %v2192_v43 = vmax.f32 %v333_v21, %v334_v33 }
  0x37   : > { %v345_v25 = vmax.f32 %v343_v46, %v344_v51  ;;  %v352_v54 = vmax.f32 %v350_v52, %v351_v30  ;;  %v358_v63 = vrot.slane %v357_v53, 4  ;;  %v364_v55 = vsel %vm286_vm1, %v275_v28, -inf }
  0x38   : > { %v371_v34 = vsel %vm286_vm1, %v2140_v58, -inf  ;;  %v2200_v0 = vmax.f32 %v340_v22, %v341_v50  ;;  %v365_v56 = vrot.slane %v364_v55, 4  ;;  %v378_v21 = vsel %vm286_vm1, %v276_v45, -inf }
  0x39   : > { %v346_v2 = vrot.slane %v345_v25, 2  ;;  %v372_v24 = vrot.slane %v371_v34, 4  ;;  %v353_v3 = vrot.slane %v352_v54, 2  ;;  %v359_v32 = vmax.f32 %v357_v53, %v358_v63 }
  0x3a   : > { %v385_v46 = vsel %vm286_vm1, %v2153_v62, -inf  ;;  %v366_v51 = vmax.f32 %v364_v55, %v365_v56  ;;  %v379_v30 = vrot.slane %v378_v21, 4  ;;  %vm2209_vm9 = vcmp.eq.s32.totalorder %v2000_v4, %v672_v35 }
  0x3b   : > { %v347_v33 = vmax.f32 %v345_v25, %v346_v2  ;;  %v373_v52 = vmax.f32 %v371_v34, %v372_v24  ;;  %v354_v22 = vmax.f32 %v352_v54, %v353_v3  ;;  %v360_v50 = vrot.slane %v359_v32, 2 }
  0x3c   : > { %v386_v53 = vrot.slane %v385_v46, 4  ;;  %v392_v45 = vsel %vm286_vm1, %v277_v29, -inf  ;;  %v367_v42 = vrot.slane %v366_v51, 2  ;;  %v380_v25 = vmax.f32 %v378_v21, %v379_v30 }
  0x3d   : > { %v348_v63 = vrot.slane %v347_v33, 1  ;;  %v374_v41 = vrot.slane %v373_v52, 2  ;;  %vm2218_vm10 = vcmp.eq.s32.totalorder %v2000_v4, %v676_v36  ;;  %vm2226_vm11 = vcmp.eq.s32.totalorder %v2000_v4, %v680_v37 }
  0x3e   : > { %vm2234_vm12 = vcmp.eq.s32.totalorder %v2000_v4, %v684_v38  ;;  %v355_v36 = vrot.slane %v354_v22, 1  ;;  %v361_v54 = vmax.f32 %v359_v32, %v360_v50  ;;  %v387_v55 = vmax.f32 %v385_v46, %v386_v53 }
  0x3f   : > { %v393_v34 = vrot.slane %v392_v45, 4  ;;  %v2238_v2 = vmax.f32 %v347_v33, %v348_v63  ;;  %v368_v56 = vmax.f32 %v366_v51, %v367_v42  ;;  %v375_v24 = vmax.f32 %v373_v52, %v374_v41 }
  0x40   : > { %v381_v37 = vrot.slane %v380_v25, 2  ;;  %vm2244_vm13 = vcmp.eq.s32.totalorder %v2000_v4, %v688_v39  ;;  %vm2252_vm14 = vcmp.eq.s32.totalorder %v2000_v4, %v692_v40  ;;  %v2256_v32 = vmax.f32 %v354_v22, %v355_v36 }
  0x41   : > { %2976 = vst [vmem:[#allocation22_spill] sm:$0xff] %v2238_v2  ;;  %v362_v41 = vrot.slane %v361_v54, 1  ;;  %v388_v42 = vrot.slane %v387_v55, 2  ;;  %v394_v21 = vmax.f32 %v392_v45, %v393_v34  ;;  %v2982_v46 = vrot.slane %v2048_v20, %v2039_v17 }
  0x42   : > { %2981 = vst [vmem:[#allocation23_spill] sm:$0xff] %v2256_v32  ;;  %v369_v33 = vrot.slane %v368_v56, 1  ;;  %v376_v51 = vrot.slane %v375_v24, 1  ;;  %v382_v52 = vmax.f32 %v380_v25, %v381_v37  ;;  %v415_v40 = vcombine.low %v2166_v31, %v2174_v57 }
  0x43   : > { %vm2262_vm15 = vcmp.eq.s32.totalorder %v2000_v4, %v2982_v46  ;;  %v2985_v30 = vrot.slane %v2048_v20, %v2042_v18  ;;  %v2988_v50 = vrot.slane %v2048_v20, %v2045_v19  ;;  %v2991_v45 = vmov 0.0  }
  0x44   : > { %v2287_v63 = vsel %vm2184_vm8, 1.0, %v2991_v45  ;;  %v389_v25 = vmax.f32 %v387_v55, %v388_v42  ;;  %v395_v36 = vrot.slane %v394_v21, 2  ;;  %v416_v34 = vcombine.low %v2176_v60, %v2178_v1 }
  0x45   : > { %vm2272_vm0 = vcmp.eq.s32.totalorder %v2000_v4, %v2985_v30  ;;  %vm2280_vm2 = vcmp.eq.s32.totalorder %v2000_v4, %v2988_v50  ;;  %2992 = vst [vmem:[#allocation24_spill] sm:$0xff] %v2287_v63  ;;  %v2291_v37 = vmax.f32 %v361_v54, %v362_v41  ;;  %v2293_v46 = vmax.f32 %v368_v56, %v369_v33 }
  0x46   : > { %v2295_v20 = vmax.f32 %v375_v24, %v376_v51  ;;  %v383_v30 = vrot.slane %v382_v52, 1  ;;  %v390_v50 = vrot.slane %v389_v25, 1  ;;  %v396_v19 = vmax.f32 %v394_v21, %v395_v36 }
  0x47   : > { %2993 = vst [vmem:[#allocation25_spill] sm:$0xff] %v2291_v37  ;;  %2994 = vst [vmem:[#allocation26_spill] sm:$0xff] %v2293_v46  ;;  %v417_v18 = vcombine.low %v2188_v47, %v2190_v27  ;;  %v418_v59 = vcombine.low %v2192_v43, %v2200_v0  ;;  %v419_v42 = vcombine.low %v2238_v2, %v2256_v32  ;;  %v2313_v33 = vsel %vm2209_vm9, 1.0, %v2991_v45 }
  0x48   : > { %2995 = vst [vmem:[#allocation27_spill] sm:$0xff] %v2295_v20  ;;  %v2301_v55 = vmax.f32 %v382_v52, %v383_v30  ;;  %v431_v54 = vsub.f32 %v2012_v8, %v415_v40  ;;  %v2306_v56 = vmax.f32 %v389_v25, %v390_v50  ;;  %v397_v24 = vrot.slane %v396_v19, 1  ;;  %2998 = vst [vmem:[#allocation30_spill] sm:$0xff] %v2313_v33 }
  0x49   : > { %v432_v41 = vsub.f32 %v2015_v9, %v416_v34  ;;  %v433_v21 = vsub.f32 %v2018_v10, %v417_v18  ;;  %v420_v51 = vcombine.low %v2291_v37, %v2293_v46  ;;  %v434_v40 = vsub.f32 %v2030_v14, %v418_v59 }
  0x4a   : > { %2996 = vst [vmem:[#allocation28_spill] sm:$0xff] %v2301_v55  ;;  %2997 = vst [vmem:[#allocation29_spill] sm:$0xff] %v2306_v56  ;;  %v421_v52 = vcombine.low %v2295_v20, %v2301_v55  ;;  %v2320_v25 = vmax.f32 %v396_v19, %v397_v24  ;;  %v439_v36 = vmul.f32 1.442695, %v431_v54  ;;  %v2325_v18 = vsel %vm2218_vm10, 1.0, %v2991_v45 }
  0x4b   : > { %v441_v30 = vmul.f32 1.442695, %v432_v41  ;;  %v443_v34 = vmul.f32 1.442695, %v433_v21  ;;  %3000 = vst [vmem:[#allocation32_spill] sm:$0xff] %v2325_v18  ;;  %v2330_v28 = vsel %vm2226_vm11, 1.0, %v2991_v45  ;;  %v435_v24 = vsub.f32 %v2033_v15, %v419_v42 }
  0x4c   : > { %2999 = vst [vmem:[#allocation31_spill] sm:$0xff] %v2320_v25  ;;  %3001 = vst [vmem:[#allocation33_spill] sm:$0xff] %v2330_v28  ;;  %v2335_v50 = vsel %vm2234_vm12, 1.0, %v2991_v45  ;;  %v1928_v19 = vmov 1966171168   ;;  %v422_v54 = vcombine.low %v2306_v56, %v2320_v25  ;;  %1775 = vpow2.f32 %v439_v36 }
  0x4d   : > { %3002 = vst [vmem:[#allocation34_spill] sm:$0xff] %v2335_v50  ;;  %v1086_v59 = vunpack.c.l.s4 %v1928_v19  ;;  %v445_v5 = vmul.f32 1.442695, %v434_v40  ;;  %v2343_v35 = vsel %vm2244_vm13, 1.0, %v2991_v45  ;;  %v2348_v29 = vsel %vm2252_vm14, 1.0, %v2991_v45 }
  0x4e   : > { %3003 = vst [vmem:[#allocation35_spill] sm:$0xff] %v2343_v35  ;;  %3004 = vst [vmem:[#allocation36_spill] sm:$0xff] %v2348_v29  ;;  %v436_v41 = vsub.f32 %v2036_v16, %v420_v51  ;;  %1777 = vpow2.f32 %v441_v30  ;;  %v2354_v21 = vsel %vm2262_vm15, 1.0, %v2991_v45  ;;  %v437_v42 = vsub.f32 %v2140_v58, %v421_v52 }
  0x4f   : > { %3005 = vst [vmem:[#allocation37_spill] sm:$0xff] %v2354_v21  ;;  %1779 = vpow2.f32 %v443_v34  ;;  %v769_v3 = vcombine.low %v2114_v48, %v2117_v49  ;;  %v2362_v38 = vsel %vm2272_vm0, 1.0, %v2991_v45  ;;  %v2367_v51 = vsel %vm2280_vm2, 1.0, %v2991_v45 }
  0x50   : > { %3006 = vst [vmem:[#allocation38_spill] sm:$0xff] %v2362_v38  ;;  %3007 = vst [vmem:[#allocation39_spill] sm:$0xff] %v2367_v51  ;;  %v438_v39 = vsub.f32 %v2153_v62, %v422_v54  ;;  %v770_v40 = vcombine.low %v2137_v26, %v2145_v61  ;;  %v1087_v52 = vunpack.c.0.s8 %v1086_v59  ;;  %1781 = vpow2.f32 %v445_v5 }
  0x51   : > { %v447_v36 = vmul.f32 1.442695, %v435_v24  ;;  %v771_v30 = vcombine.low %v2150_v44, %v2158_v23  ;;  %v449_v34 = vmul.f32 1.442695, %v436_v41  ;;  %v772_v22 = vcombine.low %v2287_v63, %v2313_v33 }
  0x52   : > { %v773_v53 = vcombine.low %v2325_v18, %v2330_v28  ;;  %v774_v45 = vcombine.low %v2335_v50, %v2343_v35  ;;  %v451_v19 = vmul.f32 1.442695, %v437_v42  ;;  %v775_v54 = vcombine.low %v2348_v29, %v2354_v21 }
  0x53   : > { %v776_v59 = vcombine.low %v2362_v38, %v2367_v51  ;;  %v785_v24 = vmul.f32 %v769_v3, %v2012_v8  ;;  %v453_v5 = vmul.f32 1.442695, %v438_v39  ;;  %v786_v41 = vmul.f32 %v770_v40, %v2015_v9 }
  0x54   : > { %v2387_v17 = vsub.s32 %v1087_v52, %v2000_v4  ;;  %1783 = vpow2.f32 %v447_v36  ;;  %v787_v13 = vmul.f32 %v771_v30, %v2018_v10  ;;  %v2391_v42 = vmul.f32 %v772_v22, %v2030_v14 }
  0x55   : > { %1785 = vpow2.f32 %v449_v34  ;;  %v2394_v12 = vmul.f32 %v773_v53, %v2033_v15  ;;  %v2397_v11 = vmul.f32 %v774_v45, %v2036_v16  ;;  %v2400_v9 = vmul.f32 %v775_v54, %v2140_v58 }
  0x56   : > { %3008 = vst [vmem:[#allocation40_spill] sm:$0xff] %v2387_v17  ;;  %v1776_v8 = vpop.eup %1775  ;;  %1787 = vpow2.f32 %v451_v19  ;;  %v2403_v4 = vmul.f32 %v776_v59, %v2153_v62  ;;  %v801_v3 = vcombine.high %v785_v24, %v785_v24  ;;  %v802_v40 = vcombine.high %v786_v41, %v786_v41 }
  0x57   : > { %1789 = vpow2.f32 %v453_v5  ;;  %v463_v39 = vcombine.high %v1776_v8, %v1776_v8  ;;  %v479_v14 = vsel %vm286_vm1, %v1776_v8, 0.0  ;;  %v803_v30 = vcombine.high %v787_v13, %v787_v13 }
  0x58   : > { %v1778_v10 = vpop.eup %1777  ;;  %v480_v36 = vrot.slane %v479_v14, 4  ;;  %v817_v8 = vsel %vm286_vm1, %v785_v24, 0.0  ;;  %v2417_v7 = vsel %vm286_vm1, %v786_v41, 0.0  ;;  %v2432_v24 = vsel %vm286_vm1, %v787_v13, 0.0 }
  0x59   : > { %v1780_v15 = vpop.eup %1779  ;;  %v464_v52 = vcombine.high %v1778_v10, %v1778_v10  ;;  %v493_v16 = vsel %vm286_vm1, %v1778_v10, 0.0  ;;  %v486_v58 = vsel %vm286_vm1, %v463_v39, 0.0  ;;  %v2414_v10 = vsel %vm286_vm1, %v801_v3, 0.0 }
  0x5a   : > { %v465_v34 = vcombine.high %v1780_v15, %v1780_v15  ;;  %v494_v22 = vrot.slane %v493_v16, 4  ;;  %v507_v62 = vsel %vm286_vm1, %v1780_v15, 0.0  ;;  %v1782_v53 = vpop.eup %1781  ;;  %v481_v45 = vadd.f32 %v480_v36, %v479_v14 }
  0x5b   : > { %v487_v19 = vrot.slane %v486_v58, 4  ;;  %v500_v54 = vsel %vm286_vm1, %v464_v52, 0.0  ;;  %v508_v6 = vrot.slane %v507_v62, 4  ;;  %v2421_v14 = vsel %vm286_vm1, %v802_v40, 0.0 }
  0x5c   : > { %v495_v5 = vadd.f32 %v494_v22, %v493_v16  ;;  %v501_v39 = vrot.slane %v500_v54, 4  ;;  %v514_v15 = vsel %vm286_vm1, %v465_v34, 0.0  ;;  %v466_v52 = vcombine.high %v1782_v53, %v1782_v53 }
  0x5d   : > { %v482_v36 = vrot.slane %v481_v45, 2  ;;  %v488_v22 = vadd.f32 %v487_v19, %v486_v58  ;;  %v515_v41 = vrot.slane %v514_v15, 4  ;;  %v818_v25 = vrot.slane %v817_v8, 4 }
  0x5e   : > { %v1784_v3 = vpop.eup %1783  ;;  %v496_v59 = vrot.slane %v495_v5, 2  ;;  %v521_v51 = vsel %vm286_vm1, %v1782_v53, 0.0  ;;  %v502_v29 = vadd.f32 %v501_v39, %v500_v54  ;;  %v509_v16 = vadd.f32 %v508_v6, %v507_v62 }
  0x5f   : > { %v1786_v17 = vpop.eup %1785  ;;  %v522_v35 = vrot.slane %v521_v51, 4  ;;  %v483_v19 = vadd.f32 %v482_v36, %v481_v45  ;;  %v516_v50 = vadd.f32 %v515_v41, %v514_v15  ;;  %v528_v28 = vsel %vm286_vm1, %v466_v52, 0.0 }
  0x60   : > { %v1788_v21 = vpop.eup %1787  ;;  %v2436_v53 = vsel %vm286_vm1, %v803_v30, 0.0  ;;  %v467_v34 = vcombine.high %v1784_v3, %v1784_v3  ;;  %v489_v18 = vrot.slane %v488_v22, 2  ;;  %v497_v40 = vadd.f32 %v496_v59, %v495_v5 }
  0x61   : > { %v1790_v58 = vpop.eup %1789  ;;  %v2438_v33 = vadd.f32 %v818_v25, %v817_v8  ;;  %v468_v38 = vcombine.high %v1786_v17, %v1786_v17  ;;  %v469_v54 = vcombine.high %v1788_v21, %v1788_v21  ;;  %v523_v6 = vadd.f32 %v522_v35, %v521_v51 }
  0x62   : > { %v529_v62 = vrot.slane %v528_v28, 4  ;;  %v470_v39 = vcombine.high %v1790_v58, %v1790_v58  ;;  %v503_v13 = vrot.slane %v502_v29, 2  ;;  %v510_v63 = vrot.slane %v509_v16, 2 }
  0x63   : > { %v535_v45 = vsel %vm286_vm1, %v1784_v3, 0.0  ;;  %v484_v15 = vrot.slane %v483_v19, 1  ;;  %v517_v36 = vrot.slane %v516_v50, 2  ;;  %v490_v30 = vadd.f32 %v489_v18, %v488_v22 }
  0x64   : > { %v530_v52 = vadd.f32 %v529_v62, %v528_v28  ;;  %v536_v41 = vrot.slane %v535_v45, 4  ;;  %v498_v23 = vrot.slane %v497_v40, 1  ;;  %v542_v44 = vsel %vm286_vm1, %v467_v34, 0.0 }
  0x65   : > { %v549_v25 = vsel %vm286_vm1, %v1786_v17, 0.0  ;;  %v524_v59 = vrot.slane %v523_v6, 2  ;;  %v543_v8 = vrot.slane %v542_v44, 4  ;;  %v504_v51 = vadd.f32 %v503_v13, %v502_v29 }
  0x66   : > { %v537_v5 = vadd.f32 %v536_v41, %v535_v45  ;;  %v550_v35 = vrot.slane %v549_v25, 4  ;;  %v531_v61 = vrot.slane %v530_v52, 2  ;;  %v556_v26 = vsel %vm286_vm1, %v468_v38, 0.0 }
  0x67   : > { %v563_v3 = vsel %vm286_vm1, %v1788_v21, 0.0  ;;  %v511_v49 = vadd.f32 %v510_v63, %v509_v16  ;;  %v518_v48 = vadd.f32 %v517_v36, %v516_v50  ;;  %v544_v28 = vadd.f32 %v543_v8, %v542_v44 }
  0x68   : > { %v551_v62 = vadd.f32 %v550_v35, %v549_v25  ;;  %v538_v18 = vrot.slane %v537_v5, 2  ;;  %v557_v22 = vrot.slane %v556_v26, 4  ;;  %v564_v56 = vrot.slane %v563_v3, 4 }
  0x69   : > { %v570_v34 = vsel %vm286_vm1, %v469_v54, 0.0  ;;  %v485_v17 = vadd.f32 %v484_v15, %v483_v19  ;;  %v491_v55 = vrot.slane %v490_v30, 1  ;;  %v525_v45 = vadd.f32 %v524_v59, %v523_v6 }
  0x6a   : > { %v545_v41 = vrot.slane %v544_v28, 2  ;;  %v532_v20 = vadd.f32 %v531_v61, %v530_v52  ;;  %v558_v29 = vadd.f32 %v557_v22, %v556_v26  ;;  %v571_v13 = vrot.slane %v570_v34, 4 }
  0x6b   : > { %v577_v38 = vsel %vm286_vm1, %v1790_v58, 0.0  ;;  %v505_v46 = vrot.slane %v504_v51, 1  ;;  %v512_v21 = vrot.slane %v511_v49, 1  ;;  %v552_v63 = vrot.slane %v551_v62, 2 }
  0x6c   : > { %v565_v50 = vadd.f32 %v564_v56, %v563_v3  ;;  %v519_v44 = vrot.slane %v518_v48, 1  ;;  %v539_v16 = vadd.f32 %v538_v18, %v537_v5  ;;  %v559_v36 = vrot.slane %v558_v29, 2 }
  0x6d   : > { %v578_v25 = vrot.slane %v577_v38, 4  ;;  %v499_v8 = vadd.f32 %v498_v23, %v497_v40  ;;  %v546_v35 = vadd.f32 %v545_v41, %v544_v28  ;;  %v572_v54 = vadd.f32 %v571_v13, %v570_v34 }
  0x6e   : > { %v584_v19 = vsel %vm286_vm1, %v470_v39, 0.0  ;;  %v492_v6 = vadd.f32 %v491_v55, %v490_v30  ;;  %v526_v15 = vrot.slane %v525_v45, 1  ;;  %v533_v61 = vrot.slane %v532_v20, 1 }
  0x6f   : > { %v579_v26 = vadd.f32 %v578_v25, %v577_v38  ;;  %v553_v52 = vadd.f32 %v552_v63, %v551_v62  ;;  %v560_v59 = vadd.f32 %v559_v36, %v558_v29  ;;  %v566_v58 = vrot.slane %v565_v50, 2 }
  0x70   : > { %v585_v22 = vrot.slane %v584_v19, 4  ;;  %v506_v37 = vadd.f32 %v505_v46, %v504_v51  ;;  %v513_v32 = vadd.f32 %v512_v21, %v511_v49  ;;  %v520_v56 = vadd.f32 %v519_v44, %v518_v48 }
  0x71   : > { %v540_v3 = vrot.slane %v539_v16, 1  ;;  %v547_v5 = vrot.slane %v546_v35, 1  ;;  %v573_v18 = vrot.slane %v572_v54, 2  ;;  %v3009_v23 = vrot.slane %v2414_v10, 4 }
  0x72   : > { %v586_v2 = vadd.f32 %v585_v22, %v584_v19  ;;  %v527_v39 = vadd.f32 %v526_v15, %v525_v45  ;;  %v534_v55 = vadd.f32 %v533_v61, %v532_v20  ;;  %v580_v30 = vrot.slane %v579_v26, 2 }
  0x73   : > { %v826_v40 = vadd.f32 %v3009_v23, %v2414_v10  ;;  %1791 = vlog2.f32 %v485_v17  ;;  %v554_v28 = vrot.slane %v553_v52, 1  ;;  %v561_v62 = vrot.slane %v560_v59, 1 }
  0x74   : > { %v567_v34 = vadd.f32 %v566_v58, %v565_v50  ;;  %1793 = vlog2.f32 %v492_v6  ;;  %v541_v41 = vadd.f32 %v540_v3, %v539_v16  ;;  %v587_v46 = vrot.slane %v586_v2, 2 }
  0x75   : > { %v820_v48 = vrot.slane %v2438_v33, 2  ;;  %v3010_v49 = vrot.slane %v2417_v7, 4  ;;  %v548_v29 = vadd.f32 %v547_v5, %v546_v35  ;;  %v574_v13 = vadd.f32 %v573_v18, %v572_v54 }
  0x76   : > { %1795 = vlog2.f32 %v499_v8  ;;  %v827_v10 = vrot.slane %v826_v40, 2  ;;  %v581_v45 = vadd.f32 %v580_v30, %v579_v26  ;;  %v3011_v17 = vrot.slane %v2421_v14, 4 }
  0x77   : > { %v833_v51 = vadd.f32 %v3010_v49, %v2417_v7  ;;  %1797 = vlog2.f32 %v506_v37  ;;  %v555_v21 = vadd.f32 %v554_v28, %v553_v52  ;;  %v562_v63 = vadd.f32 %v561_v62, %v560_v59 }
  0x78   : > { %v840_v38 = vadd.f32 %v3011_v17, %v2421_v14  ;;  %v568_v50 = vrot.slane %v567_v34, 1  ;;  %1799 = vlog2.f32 %v513_v32  ;;  %v588_v44 = vadd.f32 %v587_v46, %v586_v2 }
  0x79   : > { %v834_v20 = vrot.slane %v833_v51, 2  ;;  %1801 = vlog2.f32 %v520_v56  ;;  %v821_v16 = vadd.f32 %v820_v48, %v2438_v33  ;;  %v846_v7 = vrot.slane %v2432_v24, 4 }
  0x7a   : > { %1803 = vlog2.f32 %v527_v39  ;;  %v828_v36 = vadd.f32 %v827_v10, %v826_v40  ;;  %v841_v25 = vrot.slane %v840_v38, 2  ;;  %v853_v37 = vrot.slane %v2436_v53, 4 }
  0x7b   : > { %v575_v8 = vrot.slane %v574_v13, 1  ;;  %v582_v35 = vrot.slane %v581_v45, 1  ;;  %1805 = vlog2.f32 %v534_v55  ;;  %v835_v54 = vadd.f32 %v834_v20, %v833_v51 }
  0x7c   : > { %1807 = vlog2.f32 %v541_v41  ;;  %v847_v14 = vadd.f32 %v846_v7, %v2432_v24  ;;  %v854_v32 = vadd.f32 %v853_v37, %v2436_v53  ;;  %v859_v2 = vsel %vm286_vm1, %v2391_v42, 0.0 }
  0x7d   : > { %v1792_v33 = vpop.eup %1791  ;;  %v569_v19 = vadd.f32 %v568_v50, %v567_v34  ;;  %v589_v6 = vrot.slane %v588_v44, 1  ;;  %v807_v15 = vcombine.high %v2400_v9, %v2400_v9  ;;  %v822_v61 = vrot.slane %v821_v16, 1 }
  0x7e   : > { %v1794_v26 = vpop.eup %1793  ;;  %1809 = vlog2.f32 %v548_v29  ;;  %v829_v52 = vrot.slane %v828_v36, 1  ;;  %v842_v59 = vadd.f32 %v841_v25, %v840_v38  ;;  %v848_v58 = vrot.slane %v847_v14, 2 }
  0x7f   : > { %v576_v22 = vadd.f32 %v575_v8, %v574_v13  ;;  %1811 = vlog2.f32 %v555_v21  ;;  %v855_v24 = vrot.slane %v854_v32, 2  ;;  %v860_v56 = vrot.slane %v859_v2, 4 }
  0x80   : > { %v1796_v53 = vpop.eup %1795  ;;  %v583_v3 = vadd.f32 %v582_v35, %v581_v45  ;;  %v592_v5 = vmul.f32 0.6931472, %v1792_v33  ;;  %1813 = vlog2.f32 %v562_v63  ;;  %v836_v18 = vrot.slane %v835_v54, 1 }
  0x81   : > { %v1798_v23 = vpop.eup %1797  ;;  %v590_v40 = vadd.f32 %v589_v6, %v588_v44  ;;  %v594_v39 = vmul.f32 0.6931472, %v1794_v26  ;;  %v808_v55 = vcombine.high %v2403_v4, %v2403_v4  ;;  %v2469_v30 = vadd.f32 %v822_v61, %v821_v16 }
  0x82   : > { %v1800_v28 = vpop.eup %1799  ;;  %1815 = vlog2.f32 %v569_v19  ;;  %v2471_v62 = vadd.f32 %v829_v52, %v828_v36  ;;  %v843_v34 = vrot.slane %v842_v59, 1  ;;  %v849_v41 = vadd.f32 %v848_v58, %v847_v14 }
  0x83   : > { %v1802_v46 = vpop.eup %1801  ;;  %1817 = vlog2.f32 %v576_v22  ;;  %v856_v48 = vadd.f32 %v855_v24, %v854_v32  ;;  %v861_v49 = vadd.f32 %v860_v56, %v859_v2  ;;  %v3012_v51 = vcombine.high %v2391_v42, %v2391_v42 }
  0x84   : > { %v1804_v13 = vpop.eup %1803  ;;  %v596_v10 = vmul.f32 0.6931472, %v1796_v53  ;;  %1819 = vlog2.f32 %v583_v3  ;;  %v2478_v45 = vadd.f32 %v592_v5, %v2166_v31  ;;  %v2480_v20 = vadd.f32 %v836_v18, %v835_v54 }
  0x85   : > { %v866_v29 = vsel %vm286_vm1, %v3012_v51, 0.0  ;;  %v1806_v17 = vpop.eup %1805  ;;  %v598_v38 = vmul.f32 0.6931472, %v1798_v23  ;;  %v600_v21 = vmul.f32 0.6931472, %v1800_v28  ;;  %v2483_v63 = vadd.f32 %v594_v39, %v2174_v57  ;;  %v3018_v23 = vld [vmem:[#allocation22_spill] sm:$0xff] }
  0x86   : > { %v867_v50 = vrot.slane %v866_v29, 4  ;;  %v1808_v44 = vpop.eup %1807  ;;  %v602_v16 = vmul.f32 0.6931472, %v1802_v46  ;;  %v2485_v42 = vadd.f32 %v843_v34, %v842_v59  ;;  %v850_v7 = vrot.slane %v849_v41, 1 }
  0x87   : > { %v873_v36 = vsel %vm286_vm1, %v2394_v12, 0.0  ;;  %v604_v25 = vmul.f32 0.6931472, %v1804_v13  ;;  %v857_v31 = vrot.slane %v856_v48, 1  ;;  %v862_v37 = vrot.slane %v861_v49, 2 }
  0x88   : > { %v874_v8 = vrot.slane %v873_v36, 4  ;;  %v1810_v35 = vpop.eup %1809  ;;  %v606_v54 = vmul.f32 0.6931472, %v1806_v17  ;;  %1821 = vlog2.f32 %v590_v40  ;;  %v2490_v14 = vadd.f32 %v596_v10, %v2176_v60 }
  0x89   : > { %v3013_v57 = vcombine.high %v2394_v12, %v2394_v12  ;;  %v1812_v2 = vpop.eup %1811  ;;  %v608_v33 = vmul.f32 0.6931472, %v1808_v44  ;;  %v2497_v19 = vadd.f32 %v598_v38, %v2178_v1  ;;  %v2500_v6 = vadd.f32 %v600_v21, %v2188_v47 }
  0x8a   : > { %v868_v61 = vadd.f32 %v867_v50, %v866_v29  ;;  %v1814_v26 = vpop.eup %1813  ;;  %v2503_v52 = vadd.f32 %v602_v16, %v2190_v27  ;;  %v2505_v60 = vadd.f32 %v850_v7, %v849_v41  ;;  %v875_v59 = vadd.f32 %v874_v8, %v873_v36 }
  0x8b   : > { %v880_v32 = vsel %vm286_vm1, %v3013_v57, 0.0  ;;  %v610_v12 = vmul.f32 0.6931472, %v1810_v35  ;;  %v2508_v22 = vadd.f32 %v604_v25, %v2192_v43  ;;  %v2510_v24 = vadd.f32 %v857_v31, %v856_v48  ;;  %v3023_v35 = vld [vmem:[#allocation25_spill] sm:$0xff] }
  0x8c   : > { %3014 = vst [vmem:[#allocation41_spill] sm:$0xff] %v2503_v52  ;;  %v881_v58 = vrot.slane %v880_v32, 4  ;;  %v863_v1 = vadd.f32 %v862_v37, %v861_v49  ;;  %v1816_v56 = vpop.eup %1815  ;;  %v612_v53 = vmul.f32 0.6931472, %v1812_v2  ;;  %v2513_v47 = vadd.f32 %v606_v54, %v2200_v0  ;;  %v3021_v49 = vld [vmem:[#allocation23_spill] sm:$0xff] }
  0x8d   : > { %3015 = vst [vmem:[#allocation42_spill] sm:$0xff] %v2508_v22  ;;  %3016 = vst [vmem:[#allocation43_spill] sm:$0xff] %v2510_v24  ;;  %v887_v27 = vsel %vm286_vm1, %v2397_v11, 0.0  ;;  %v1818_v5 = vpop.eup %1817  ;;  %v614_v18 = vmul.f32 0.6931472, %v1814_v26  ;;  %v2518_v40 = vadd.f32 %v608_v33, %v3018_v23  ;;  %v869_v39 = vrot.slane %v868_v61, 2 }
  0x8e   : > { %3017 = vst [vmem:[#allocation44_spill] sm:$0xff] %v2513_v47  ;;  %v882_v3 = vadd.f32 %v881_v58, %v880_v32  ;;  %v888_v43 = vrot.slane %v887_v27, 4  ;;  %v1820_v28 = vpop.eup %1819  ;;  %v876_v34 = vrot.slane %v875_v59, 2  ;;  %v3020_v46 = vcombine.high %v2397_v11, %v2397_v11  ;;  %v3025_v32 = vld [vmem:[#allocation26_spill] sm:$0xff]  ;;  %v3027_v33 = vld [vmem:[#allocation27_spill] sm:$0xff] }
  0x8f   : > { %3019 = vst [vmem:[#allocation22_spill] sm:$0xff] %v2518_v40  ;;  %v901_v48 = vsel %vm286_vm1, %v2400_v9, 0.0  ;;  %v2527_v51 = vadd.f32 %v610_v12, %v3021_v49  ;;  %v864_v29 = vrot.slane %v863_v1, 1  ;;  %v616_v17 = vmul.f32 0.6931472, %v1816_v56  ;;  %v3030_v12 = vld [vmem:[#allocation28_spill] sm:$0xff] }
  0x90   : > { %v883_v41 = vrot.slane %v882_v3, 2  ;;  %v894_v0 = vsel %vm286_vm1, %v3020_v46, 0.0  ;;  %v889_v13 = vadd.f32 %v888_v43, %v887_v27  ;;  %v902_v38 = vrot.slane %v901_v48, 4  ;;  %v3035_v46 = vld [vmem:[#allocation17_spill] sm:$0xff] }
  0x91   : > { %3022 = vst [vmem:[#allocation23_spill] sm:$0xff] %v2527_v51  ;;  %v895_v10 = vrot.slane %v894_v0, 4  ;;  %v908_v21 = vsel %vm286_vm1, %v807_v15, 0.0  ;;  %v915_v11 = vsel %vm286_vm1, %v2403_v4, 0.0  ;;  %v618_v50 = vmul.f32 0.6931472, %v1818_v5 }
  0x92   : > { %v620_v44 = vmul.f32 0.6931472, %v1820_v28  ;;  %v2535_v16 = vadd.f32 %v869_v39, %v868_v61  ;;  %v909_v7 = vrot.slane %v908_v21, 4  ;;  %v1822_v36 = vpop.eup %1821  ;;  %v2537_v25 = vadd.f32 %v876_v34, %v875_v59  ;;  %v3034_v34 = vld [vmem:[#allocation16_spill] sm:$0xff] }
  0x93   : > { %v2539_v31 = vadd.f32 %v883_v41, %v882_v3  ;;  %v890_v37 = vrot.slane %v889_v13, 2  ;;  %v2541_v8 = vadd.f32 %v895_v10, %v894_v0  ;;  %v2544_v9 = vadd.f32 %v612_v53, %v3023_v35  ;;  %v3032_v53 = vld [vmem:[#allocation29_spill] sm:$0xff]  ;;  %v3038_v10 = vld [vmem:[#allocation20_spill] sm:$0xff] }
  0x94   : > { %v2546_v15 = vadd.f32 %v902_v38, %v901_v48  ;;  %v2548_v54 = vadd.f32 %v909_v7, %v908_v21  ;;  %v916_v57 = vrot.slane %v915_v11, 4  ;;  %v2551_v2 = vadd.f32 %v614_v18, %v3025_v32  ;;  %v3036_v48 = vld [vmem:[#allocation18_spill] sm:$0xff]  ;;  %v3039_v38 = vld [vmem:[#allocation21_spill] sm:$0xff] }
  0x95   : > { %3024 = vst [vmem:[#allocation25_spill] sm:$0xff] %v2544_v9  ;;  %v2554_v61 = vadd.f32 %v616_v17, %v3027_v33  ;;  %v2556_v26 = vadd.f32 %v864_v29, %v863_v1  ;;  %v2562_v59 = vsel %vm286_vm1, %v808_v55, 0.0  ;;  %v2564_v58 = vmul.f32 0.6931472, %v1822_v36  ;;  %v3037_v29 = vld [vmem:[#allocation19_spill] sm:$0xff]  ;;  %v3041_v7 = vld [vmem:[#allocation30_spill] sm:$0xff] }
  0x96   : > { %3026 = vst [vmem:[#allocation26_spill] sm:$0xff] %v2551_v2  ;;  %v2567_v56 = vadd.f32 %v618_v50, %v3030_v12  ;;  %v2570_v3 = vadd.f32 %v620_v44, %v3032_v53  ;;  %v2575_v18 = vadd.f32 %v890_v37, %v889_v13  ;;  %v2580_v43 = vadd.f32 %v916_v57, %v915_v11  ;;  %v3040_v50 = vld [vmem:[#allocation24_spill] sm:$0xff]  ;;  %v3043_v35 = vld [vmem:[#allocation33_spill] sm:$0xff]  ;;  %v3044_v32 = vld [vmem:[#allocation34_spill] sm:$0xff] }
  0x97   : > { %3028 = vst [vmem:[#allocation27_spill] sm:$0xff] %v2554_v61  ;;  %3029 = vst [vmem:[#allocation45_spill] sm:$0xff] %v2556_v26  ;;  %v3042_v11 = vld [vmem:[#allocation32_spill] sm:$0xff]  ;;  %v3045_v12 = vld [vmem:[#allocation35_spill] sm:$0xff]  ;;  %vm1400_vm3 = vcmask 1040384   ;;  %vm1443_vm5 = vcmask 0  }
  0x98   : > { %3031 = vst [vmem:[#allocation28_spill] sm:$0xff] %v2567_v56  ;;  %3033 = vst [vmem:[#allocation29_spill] sm:$0xff] %v2570_v3 }
  0x9d   : > { %v933_v55 = vpop.permute.xlu0 %932 }
  0x9e   : > { %v935_v41 = vmul.f32 %v3034_v34, %v933_v55  ;;  %v936_v0 = vmul.f32 %v3035_v46, %v933_v55  ;;  %v937_v49 = vmul.f32 %v3036_v48, %v933_v55  ;;  %v938_v13 = vmul.f32 %v3037_v29, %v933_v55  ;;  %v3046_v34 = vld [vmem:[#allocation36_spill] sm:$0xff]  ;;  %v3047_v48 = vld [vmem:[#allocation37_spill] sm:$0xff] }
  0x9f   : > { %v939_v17 = vmul.f32 %v3038_v10, %v933_v55  ;;  %v940_v21 = vmul.f32 %v3039_v38, %v933_v55  ;;  %v941_v44 = vmul.f32 %v3040_v50, %v933_v55  ;;  %v942_v36 = vmul.f32 %v3041_v7, %v933_v55  ;;  %v3048_v10 = vld [vmem:[#allocation38_spill] sm:$0xff]  ;;  %v3049_v50 = vld [vmem:[#allocation39_spill] sm:$0xff] }
  0xa0   : > { %v943_v37 = vmul.f32 %v3042_v11, %v933_v55  ;;  %v944_v57 = vmul.f32 %v3043_v35, %v933_v55  ;;  %v945_v33 = vmul.f32 %v3044_v32, %v933_v55  ;;  %v946_v53 = vmul.f32 %v3045_v12, %v933_v55 }
  0xa1   : > { %v2596_v46 = vmul.f32 %v3046_v34, %v933_v55  ;;  %v2599_v29 = vmul.f32 %v3047_v48, %v933_v55  ;;  %v2602_v38 = vmul.f32 %v3048_v10, %v933_v55  ;;  %v2605_v1 = vmul.f32 %v3049_v50, %v933_v55 }
  0xa2   : > { %v951_v7 = vsel %vm286_vm1, %v935_v41, 0.0  ;;  %v958_v11 = vsel %vm286_vm1, %v936_v0, 0.0  ;;  %v965_v35 = vsel %vm286_vm1, %v937_v49, 0.0  ;;  %v972_v32 = vsel %vm286_vm1, %v938_v13, 0.0 }
  0xa3   : > { %v952_v12 = vrot.slane %v951_v7, 4  ;;  %v959_v34 = vrot.slane %v958_v11, 4  ;;  %v966_v5 = vrot.slane %v965_v35, 4  ;;  %v973_v27 = vrot.slane %v972_v32, 4 }
  0xa4   : > { %v979_v48 = vsel %vm286_vm1, %v939_v17, 0.0  ;;  %v986_v10 = vsel %vm286_vm1, %v940_v21, 0.0  ;;  %v993_v39 = vsel %vm286_vm1, %v941_v44, 0.0  ;;  %v1000_v55 = vsel %vm286_vm1, %v942_v36, 0.0 }
  0xa5   : > { %v953_v50 = vadd.f32 %v952_v12, %v951_v7  ;;  %v960_v41 = vadd.f32 %v959_v34, %v958_v11  ;;  %v967_v23 = vadd.f32 %v966_v5, %v965_v35  ;;  %v974_v0 = vadd.f32 %v973_v27, %v972_v32 }
  0xa6   : > { %v980_v28 = vrot.slane %v979_v48, 4  ;;  %v987_v49 = vrot.slane %v986_v10, 4  ;;  %v994_v4 = vrot.slane %v993_v39, 4  ;;  %v1001_v13 = vrot.slane %v1000_v55, 4 }
  0xa7   : > { %v954_v3 = vrot.slane %v953_v50, 2  ;;  %v961_v56 = vrot.slane %v960_v41, 2  ;;  %v968_v61 = vrot.slane %v967_v23, 2  ;;  %v975_v2 = vrot.slane %v974_v0, 2 }
  0xa8   : > { %v981_v9 = vadd.f32 %v980_v28, %v979_v48  ;;  %v988_v17 = vadd.f32 %v987_v49, %v986_v10  ;;  %v995_v51 = vadd.f32 %v994_v4, %v993_v39  ;;  %v1002_v21 = vadd.f32 %v1001_v13, %v1000_v55 }
  0xa9   : > { %v955_v40 = vadd.f32 %v954_v3, %v953_v50  ;;  %v962_v44 = vadd.f32 %v961_v56, %v960_v41  ;;  %v969_v47 = vadd.f32 %v968_v61, %v967_v23  ;;  %v976_v36 = vadd.f32 %v975_v2, %v974_v0 }
  0xaa   : > { %v982_v7 = vrot.slane %v981_v9, 2  ;;  %v989_v11 = vrot.slane %v988_v17, 2  ;;  %v996_v5 = vrot.slane %v995_v51, 2  ;;  %v1003_v27 = vrot.slane %v1002_v21, 2 }
  0xab   : > { %v956_v35 = vrot.slane %v955_v40, 1  ;;  %v963_v32 = vrot.slane %v962_v44, 1  ;;  %v970_v12 = vrot.slane %v969_v47, 1  ;;  %v977_v34 = vrot.slane %v976_v36, 1 }
  0xac   : > { %v983_v22 = vadd.f32 %v982_v7, %v981_v9  ;;  %v990_v26 = vadd.f32 %v989_v11, %v988_v17  ;;  %v997_v52 = vadd.f32 %v996_v5, %v995_v51  ;;  %v1004_v24 = vadd.f32 %v1003_v27, %v1002_v21 }
  0xad   : > { %v2615_v28 = vadd.f32 %v956_v35, %v955_v40  ;;  %v2617_v4 = vadd.f32 %v963_v32, %v962_v44  ;;  %v2619_v3 = vadd.f32 %v970_v12, %v969_v47  ;;  %v2621_v61 = vadd.f32 %v977_v34, %v976_v36 }
  0xae   : > { %v984_v2 = vrot.slane %v983_v22, 1  ;;  %v991_v56 = vrot.slane %v990_v26, 1  ;;  %v998_v23 = vrot.slane %v997_v52, 1  ;;  %v1005_v39 = vrot.slane %v1004_v24, 1 }
  0xaf   : > { %v1007_v48 = vsel %vm286_vm1, %v943_v37, 0.0  ;;  %v1014_v10 = vsel %vm286_vm1, %v944_v57, 0.0  ;;  %v1021_v9 = vsel %vm286_vm1, %v945_v33, 0.0  ;;  %v1028_v51 = vsel %vm286_vm1, %v946_v53, 0.0 }
  0xb0   : > { %v2627_v40 = vadd.f32 %v984_v2, %v983_v22  ;;  %v2629_v55 = vadd.f32 %v991_v56, %v990_v26  ;;  %v2631_v47 = vadd.f32 %v998_v23, %v997_v52  ;;  %v2633_v50 = vadd.f32 %v1005_v39, %v1004_v24 }
  0xb1   : > { %v1008_v41 = vrot.slane %v1007_v48, 4  ;;  %v1015_v0 = vrot.slane %v1014_v10, 4  ;;  %v1022_v49 = vrot.slane %v1021_v9, 4  ;;  %v1029_v13 = vrot.slane %v1028_v51, 4 }
  0xb2   : > { %v1035_v37 = vsel %vm286_vm1, %v2596_v46, 0.0  ;;  %v1042_v57 = vsel %vm286_vm1, %v2599_v29, 0.0  ;;  %v1049_v22 = vsel %vm286_vm1, %v2602_v38, 0.0  ;;  %v1056_v26 = vsel %vm286_vm1, %v2605_v1, 0.0 }
  0xb3   : > { %v1009_v52 = vadd.f32 %v1008_v41, %v1007_v48  ;;  %v1016_v33 = vadd.f32 %v1015_v0, %v1014_v10  ;;  %v1023_v24 = vadd.f32 %v1022_v49, %v1021_v9  ;;  %v1030_v53 = vadd.f32 %v1029_v13, %v1028_v51 }
  0xb4   : > { %v1036_v17 = vrot.slane %v1035_v37, 4  ;;  %v1043_v21 = vrot.slane %v1042_v57, 4  ;;  %v1050_v44 = vrot.slane %v1049_v22, 4  ;;  %v1057_v36 = vrot.slane %v1056_v26, 4 }
  0xb5   : > { %v1010_v7 = vrot.slane %v1009_v52, 2  ;;  %v1017_v11 = vrot.slane %v1016_v33, 2  ;;  %v1024_v46 = vrot.slane %v1023_v24, 2  ;;  %v1031_v5 = vrot.slane %v1030_v53, 2 }
  0xb6   : > { %v1037_v27 = vadd.f32 %v1036_v17, %v1035_v37  ;;  %v1044_v29 = vadd.f32 %v1043_v21, %v1042_v57  ;;  %v1051_v35 = vadd.f32 %v1050_v44, %v1049_v22  ;;  %v1058_v32 = vadd.f32 %v1057_v36, %v1056_v26  ;;  %v1823_v17 = vld [vmem:[%s1990_s30] sm:$0xff] }
  0xb7   : > { %v1011_v38 = vadd.f32 %v1010_v7, %v1009_v52  ;;  %v1018_v12 = vadd.f32 %v1017_v11, %v1016_v33  ;;  %v1025_v34 = vadd.f32 %v1024_v46, %v1023_v24  ;;  %v1032_v1 = vadd.f32 %v1031_v5, %v1030_v53 }
  0xb8   : > { %v1038_v2 = vrot.slane %v1037_v27, 2  ;;  %v1045_v56 = vrot.slane %v1044_v29, 2  ;;  %v1052_v23 = vrot.slane %v1051_v35, 2  ;;  %v1059_v39 = vrot.slane %v1058_v32, 2 }
  0xb9   : > { %v1012_v48 = vrot.slane %v1011_v38, 1  ;;  %v1019_v10 = vrot.slane %v1018_v12, 1  ;;  %v1026_v9 = vrot.slane %v1025_v34, 1  ;;  %v1033_v51 = vrot.slane %v1032_v1, 1 }
  0xba   : > { %v1039_v41 = vadd.f32 %v1038_v2, %v1037_v27  ;;  %v1046_v0 = vadd.f32 %v1045_v56, %v1044_v29  ;;  %v1053_v49 = vadd.f32 %v1052_v23, %v1051_v35  ;;  %v1060_v13 = vadd.f32 %v1059_v39, %v1058_v32  ;;  %v3050_v29 = vld [vmem:[#allocation40_spill] sm:$0xff] }
  0xbb   : > { %v1013_v37 = vadd.f32 %v1012_v48, %v1011_v38  ;;  %v1020_v57 = vadd.f32 %v1019_v10, %v1018_v12  ;;  %v1027_v22 = vadd.f32 %v1026_v9, %v1025_v34  ;;  %v1034_v26 = vadd.f32 %v1033_v51, %v1032_v1 }
  0xbc   : > { %v1040_v52 = vrot.slane %v1039_v41, 1  ;;  %v1047_v33 = vrot.slane %v1046_v0, 1  ;;  %v1054_v24 = vrot.slane %v1053_v49, 1  ;;  %v1061_v53 = vrot.slane %v1060_v13, 1 }
  0xbd   : > { %vm1063_vm1 = vcmp.ne.s32.totalorder %v1823_v17, 4294967295  ;;  %v1081_v21 = vcombine.low %v2615_v28, %v2617_v4  ;;  %v1082_v44 = vcombine.low %v2619_v3, %v2621_v61  ;;  %v1083_v36 = vcombine.low %v2627_v40, %v2629_v55  ;;  %v1824_v55 = vld [vmem:[%s1990_s30 + $0x8] sm:$0xff] }
  0xbe   : > { %v1084_v7 = vcombine.low %v2631_v47, %v2633_v50  ;;  %v1041_v11 = vadd.f32 %v1040_v52, %v1039_v41  ;;  %v1048_v46 = vadd.f32 %v1047_v33, %v1046_v0  ;;  %v1055_v5 = vadd.f32 %v1054_v24, %v1053_v49 }
  0xbf   : > { %v1062_v27 = vadd.f32 %v1061_v53, %v1060_v13  ;;  %v1091_v35 = vrot.slane %v1081_v21, %v3050_v29  ;;  %v1098_v32 = vrot.slane %v1082_v44, %v3050_v29  ;;  %v1105_v28 = vrot.slane %v1083_v36, %v3050_v29  ;;  %v3055_v13 = vld [vmem:[#allocation31_spill] sm:$0xff] }
  0xc0   : > { %v1112_v4 = vrot.slane %v1084_v7, %v3050_v29  ;;  %v1130_v3 = vcombine.low %v1013_v37, %v1020_v57  ;;  %v1131_v61 = vcombine.low %v1027_v22, %v1034_v26  ;;  %v1132_v38 = vcombine.low %v1041_v11, %v1048_v46  ;;  %v3059_v46 = vld [vmem:[#allocation8_spill] sm:$0xff] }
  0xc1   : > { %v1133_v40 = vcombine.low %v1055_v5, %v1062_v27  ;;  %vm1064_vm4 = vcmp.ne.s32.totalorder %v1824_v55, 4294967295  ;;  %v1113_v47 = vcombine.low %v1091_v35, %v1098_v32  ;;  %v3051_v12 = vrot.slane %v2541_v8, 2  ;;  %v3060_v27 = vld [vmem:[#allocation9_spill] sm:$0xff] }
  0xc2   : > { %v1114_v50 = vcombine.low %v1105_v28, %v1112_v4  ;;  %v3052_v1 = vrot.slane %v2562_v59, 4  ;;  %v1140_v56 = vrot.slane %v1130_v3, %v3050_v29  ;;  %v1147_v23 = vrot.slane %v1131_v61, %v3050_v29  ;;  %v3061_v3 = vld [vmem:[#allocation10_spill] sm:$0xff] }
  0xc3   : > { %v898_v34 = vadd.f32 %v3051_v12, %v2541_v8  ;;  %v1154_v39 = vrot.slane %v1132_v38, %v3050_v29  ;;  %v1161_v48 = vrot.slane %v1133_v40, %v3050_v29  ;;  %v1121_v10 = vrot.slane %v1113_v47, %v3050_v29 }
  0xc4   : > { %v924_v2 = vadd.f32 %v3052_v1, %v2562_v59  ;;  %v1128_v9 = vrot.slane %v1114_v50, %v3050_v29  ;;  %v3053_v51 = vrot.slane %v2546_v15, 2  ;;  %v3054_v41 = vrot.slane %v2548_v54, 2  ;;  %v3062_v50 = vld [vmem:[#allocation11_spill] sm:$0xff] }
  0xc5   : > { %v1162_v0 = vcombine.low %v1140_v56, %v1147_v23  ;;  %v1163_v49 = vcombine.low %v1154_v39, %v1161_v48  ;;  %v2677_v37 = vadd.f32 %v2564_v58, %v3055_v13  ;;  %v3056_v57 = vrot.slane %v2535_v16, 1 }
  0xc6   : > { %v905_v8 = vadd.f32 %v3053_v51, %v2546_v15  ;;  %v912_v59 = vadd.f32 %v3054_v41, %v2548_v54  ;;  %v1129_v26 = vcombine.low %v1121_v10, %v1128_v9  ;;  %v3057_v52 = vrot.slane %v2537_v25, 1  ;;  %v3066_v10 = vld [vmem:[#allocation43_spill] sm:$0xff]  ;;  %v3067_v9 = vld [vmem:[#allocation41_spill] sm:$0xff]  ;;  %v3069_v41 = vld [vmem:[#allocation42_spill] sm:$0xff] }
  0xc7   : > { %v2682_v22 = vadd.f32 %v3056_v57, %v2535_v16  ;;  %v918_v33 = vrot.slane %v2580_v43, 2  ;;  %v925_v54 = vrot.slane %v924_v2, 2  ;;  %v1170_v24 = vrot.slane %v1162_v0, %v3050_v29  ;;  %v3070_v0 = vld [vmem:[#allocation15_spill] sm:$0xff] }
  0xc8   : > { %v2687_v15 = vadd.f32 %v3057_v52, %v2537_v25  ;;  %v1177_v53 = vrot.slane %v1163_v49, %v3050_v29  ;;  %v3058_v58 = vrot.slane %v2539_v31, 1  ;;  %v892_v16 = vrot.slane %v2575_v18, 1 }
  0xc9   : > { %v2697_v44 = vsel %vm1063_vm1, %v1129_v26, 0.0  ;;  %v899_v36 = vrot.slane %v898_v34, 1  ;;  %v906_v7 = vrot.slane %v905_v8, 1  ;;  %v913_v25 = vrot.slane %v912_v59, 1 }
  0xca   : > { %v886_v21 = vadd.f32 %v3058_v58, %v2539_v31  ;;  %v1178_v11 = vcombine.low %v1170_v24, %v1177_v53  ;;  %v1451_v5 = vrot.slane %v2697_v44, %v3059_v46  ;;  %v1455_v35 = vrot.slane %v2697_v44, %v3060_v27  ;;  %v3072_v53 = vld [vmem:[#allocation22_spill] sm:$0xff] }
  0xcb   : > { %v1183_v32 = vsub.f32 %v2478_v45, %v2469_v30  ;;  %v919_v31 = vadd.f32 %v918_v33, %v2580_v43  ;;  %v926_v28 = vadd.f32 %v925_v54, %v924_v2  ;;  %v1184_v17 = vsub.f32 %v2483_v63, %v2471_v62  ;;  %v3063_v63 = vld [vmem:[#allocation12_spill] sm:$0xff]  ;;  %v3065_v2 = vld [vmem:[#allocation14_spill] sm:$0xff] }
  0xcc   : > { %v1185_v4 = vsub.f32 %v2490_v14, %v2480_v20  ;;  %v1459_v61 = vrot.slane %v2697_v44, %v3061_v3  ;;  %v1528_v38 = vsel %vm1400_vm3, %v1451_v5, 0.0  ;;  %v1529_v40 = vsel %vm1400_vm3, %v1455_v35, 0.0  ;;  %v3064_v14 = vld [vmem:[#allocation13_spill] sm:$0xff]  ;;  %v3076_v5 = vld [vmem:[#allocation27_spill] sm:$0xff] }
  0xcd   : > { %v893_v47 = vadd.f32 %v892_v16, %v2575_v18  ;;  %v1463_v30 = vrot.slane %v2697_v44, %v3062_v50  ;;  %v900_v45 = vadd.f32 %v899_v36, %v898_v34  ;;  %v907_v43 = vadd.f32 %v906_v7, %v905_v8  ;;  %v3068_v8 = vld [vmem:[#allocation45_spill] sm:$0xff]  ;;  %v3073_v16 = vld [vmem:[#allocation23_spill] sm:$0xff] }
  0xce   : > { %v914_v12 = vadd.f32 %v913_v25, %v912_v59  ;;  %v2718_v62 = vsel %vm1064_vm4, %v1178_v11, 0.0  ;;  %v1467_v20 = vrot.slane %v2697_v44, %v3063_v63  ;;  %v1471_v1 = vrot.slane %v2697_v44, %v3064_v14  ;;  %v3074_v7 = vld [vmem:[#allocation25_spill] sm:$0xff]  ;;  %v3075_v11 = vld [vmem:[#allocation26_spill] sm:$0xff] }
  0xcf   : > { %v1475_v56 = vrot.slane %v2697_v44, %v3065_v2  ;;  %v1530_v23 = vadd.f32 %v1529_v40, %v1528_v38  ;;  %v920_v18 = vrot.slane %v919_v31, 1  ;;  %v927_v39 = vrot.slane %v926_v28, 1  ;;  %v3077_v38 = vld [vmem:[#allocation28_spill] sm:$0xff] }
  0xd0   : > { %v1186_v34 = vsub.f32 %v2497_v19, %v2485_v42  ;;  %v1531_v48 = vsel %vm1400_vm3, %v1459_v61, 0.0  ;;  %v1187_v55 = vsub.f32 %v2500_v6, %v2505_v60  ;;  %v1188_v51 = vsub.f32 %v3067_v9, %v3066_v10  ;;  %v3071_v42 = vld [vmem:[#allocation44_spill] sm:$0xff] }
  0xd1   : > { %v1189_v59 = vsub.f32 %v3069_v41, %v3068_v8  ;;  %v1479_v49 = vrot.slane %v2697_v44, %v3070_v0  ;;  %v1483_v13 = vrot.slane %v2718_v62, %v3059_v46  ;;  %v1532_v57 = vadd.f32 %v1531_v48, %v1530_v23 }
  0xd2   : > { %v1190_v19 = vsub.f32 %v3071_v42, %v2682_v22  ;;  %v1533_v26 = vsel %vm1400_vm3, %v1463_v30, 0.0  ;;  %v1535_v6 = vsel %vm1400_vm3, %v1467_v20, 0.0  ;;  %v1537_v60 = vsel %vm1400_vm3, %v1471_v1, 0.0  ;;  %v3078_v30 = vld [vmem:[#allocation29_spill] sm:$0xff] }
  0xd3   : > { %v1539_v52 = vsel %vm1400_vm3, %v1475_v56, 0.0  ;;  %v1534_v33 = vadd.f32 %v1533_v26, %v1532_v57  ;;  %v921_v54 = vadd.f32 %v920_v18, %v919_v31  ;;  %v928_v24 = vadd.f32 %v927_v39, %v926_v28 }
  0xd4   : > { %v1191_v58 = vsub.f32 %v3072_v53, %v2687_v15  ;;  %v1192_v36 = vsub.f32 %v3073_v16, %v886_v21  ;;  %v1193_v25 = vsub.f32 %v3074_v7, %v893_v47  ;;  %v1194_v22 = vsub.f32 %v3075_v11, %v900_v45 }
  0xd5   : > { %v1195_v35 = vsub.f32 %v3076_v5, %v907_v43  ;;  %v1536_v61 = vadd.f32 %v1535_v6, %v1534_v33  ;;  %v1196_v40 = vsub.f32 %v3077_v38, %v914_v12  ;;  %v1197_v20 = vsub.f32 %v3078_v30, %v921_v54 }
  0xd6   : > { %v1198_v1 = vsub.f32 %v2677_v37, %v928_v24  ;;  %v1216_v31 = vcombine.low %v1183_v32, %v1184_v17  ;;  %v1217_v28 = vcombine.low %v1185_v4, %v1186_v34  ;;  %v1218_v56 = vcombine.low %v1187_v55, %v1188_v51 }
  0xd7   : > { %v1219_v23 = vcombine.low %v1189_v59, %v1190_v19  ;;  %v1538_v15 = vadd.f32 %v1537_v60, %v1536_v61  ;;  %v1265_v18 = vcombine.low %v1191_v58, %v1192_v36  ;;  %v1266_v21 = vcombine.low %v1193_v25, %v1194_v22 }
  0xd8   : > { %v1267_v39 = vcombine.low %v1195_v35, %v1196_v40  ;;  %v1226_v47 = vrot.slane %v1216_v31, %v3050_v29  ;;  %v1233_v45 = vrot.slane %v1217_v28, %v3050_v29  ;;  %v1240_v43 = vrot.slane %v1218_v56, %v3050_v29 }
  0xd9   : > { %v1247_v12 = vrot.slane %v1219_v23, %v3050_v29  ;;  %v1487_v48 = vrot.slane %v2718_v62, %v3060_v27  ;;  %v1540_v37 = vadd.f32 %v1539_v52, %v1538_v15  ;;  %v1268_v32 = vcombine.low %v1197_v20, %v1198_v1 }
  0xda   : > { %v1491_v17 = vrot.slane %v2718_v62, %v3061_v3  ;;  %v1541_v4 = vsel %vm1400_vm3, %v1479_v49, 0.0  ;;  %v1248_v34 = vcombine.low %v1226_v47, %v1233_v45  ;;  %v1543_v9 = vsel %vm1400_vm3, %v1483_v13, 0.0 }
  0xdb   : > { %v1249_v55 = vcombine.low %v1240_v43, %v1247_v12  ;;  %v1542_v10 = vadd.f32 %v1541_v4, %v1540_v37  ;;  %v1275_v51 = vrot.slane %v1265_v18, %v3050_v29  ;;  %v1282_v8 = vrot.slane %v1266_v21, %v3050_v29 }
  0xdc   : > { %v1256_v41 = vrot.slane %v1248_v34, %v3050_v29  ;;  %v1289_v57 = vrot.slane %v1267_v39, %v3050_v29  ;;  %v1296_v42 = vrot.slane %v1268_v32, %v3050_v29  ;;  %v1495_v49 = vrot.slane %v2718_v62, %v3062_v50 }
  0xdd   : > { %v1263_v59 = vrot.slane %v1249_v55, %v3050_v29  ;;  %v1544_v19 = vadd.f32 %v1543_v9, %v1542_v10  ;;  %v1545_v26 = vsel %vm1400_vm3, %v1487_v48, 0.0  ;;  %v1499_v13 = vrot.slane %v2718_v62, %v3063_v63 }
  0xde   : > { %v1297_v52 = vcombine.low %v1275_v51, %v1282_v8  ;;  %v1547_v33 = vsel %vm1400_vm3, %v1491_v17, 0.0  ;;  %v1298_v54 = vcombine.low %v1289_v57, %v1296_v42  ;;  %v1503_v58 = vrot.slane %v2718_v62, %v3064_v14 }
  0xdf   : > { %v1264_v6 = vcombine.low %v1256_v41, %v1263_v59  ;;  %v1546_v60 = vadd.f32 %v1545_v26, %v1544_v19  ;;  %v1549_v16 = vsel %vm1400_vm3, %v1495_v49, 0.0  ;;  %v1507_v25 = vrot.slane %v2718_v62, %v3065_v2 }
  0xe0   : > { %v1551_v22 = vsel %vm1400_vm3, %v1499_v13, 0.0  ;;  %v1305_v5 = vrot.slane %v1297_v52, %v3050_v29  ;;  %v1511_v30 = vrot.slane %v2718_v62, %v3070_v0  ;;  %v1553_v20 = vsel %vm1400_vm3, %v1503_v58, 0.0 }
  0xe1   : > { %v1316_v24 = vmul.f32 %v1264_v6, %v2697_v44  ;;  %v1548_v53 = vadd.f32 %v1547_v33, %v1546_v60  ;;  %v1312_v44 = vrot.slane %v1298_v54, %v3050_v29  ;;  %v1555_v56 = vsel %vm1400_vm3, %v1507_v25, 0.0 }
  0xe2   : > { %v1557_v39 = vsel %vm1400_vm3, %v1511_v30, 0.0 }
  0xe3   : > { %v1323_v36 = vrot.slane %v1316_v24, %v3059_v46  ;;  %v1327_v7 = vrot.slane %v1316_v24, %v3060_v27  ;;  %v1550_v11 = vadd.f32 %v1549_v16, %v1548_v53  ;;  %v1331_v35 = vrot.slane %v1316_v24, %v3061_v3 }
  0xe4   : > { %v1335_v1 = vrot.slane %v1316_v24, %v3062_v50  ;;  %v1313_v23 = vcombine.low %v1305_v5, %v1312_v44  ;;  %v1339_v29 = vrot.slane %v1316_v24, %v3063_v63  ;;  %v1343_v47 = vrot.slane %v1316_v24, %v3064_v14 }
  0xe5   : > { %v1401_v61 = vsel %vm1400_vm3, %v1323_v36, 0.0  ;;  %v1402_v38 = vsel %vm1400_vm3, %v1327_v7, 0.0  ;;  %v1552_v40 = vadd.f32 %v1551_v22, %v1550_v11  ;;  %v1404_v15 = vsel %vm1400_vm3, %v1331_v35, 0.0 }
  0xe6   : > { %v1403_v28 = vadd.f32 %v1402_v38, %v1401_v61  ;;  %v1406_v45 = vsel %vm1400_vm3, %v1335_v1, 0.0  ;;  %v1317_v48 = vmul.f32 %v1313_v23, %v2718_v62  ;;  %v1347_v37 = vrot.slane %v1316_v24, %v3065_v2  ;;  %v1445_v1 = vld [vmem:[#allocation4] sm:$0x1] }
  0xe7   : > { %v1554_v31 = vadd.f32 %v1553_v20, %v1552_v40  ;;  %v1408_v32 = vsel %vm1400_vm3, %v1339_v29, 0.0  ;;  %v1351_v4 = vrot.slane %v1316_v24, %v3070_v0  ;;  %v1410_v34 = vsel %vm1400_vm3, %v1343_v47, 0.0  ;;  %v1199_v20 = vld [vmem:[#allocation2] sm:$0x1] }
  0xe8   : > { %v1405_v21 = vadd.f32 %v1404_v15, %v1403_v28  ;;  %v1355_v10 = vrot.slane %v1317_v48, %v3059_v46  ;;  %v1412_v9 = vsel %vm1400_vm3, %v1347_v37, 0.0  ;;  %v1359_v8 = vrot.slane %v1317_v48, %v3060_v27 }
  0xe9   : > { %v1556_v18 = vadd.f32 %v1555_v56, %v1554_v31  ;;  %v1414_v62 = vsel %vm1400_vm3, %v1351_v4, 0.0  ;;  %v1363_v59 = vrot.slane %v1317_v48, %v3061_v3  ;;  %v1367_v19 = vrot.slane %v1317_v48, %v3062_v50 }
  0xea   : > { %v1407_v12 = vadd.f32 %v1406_v45, %v1405_v21  ;;  %v1416_v57 = vsel %vm1400_vm3, %v1355_v10, 0.0  ;;  %v1418_v49 = vsel %vm1400_vm3, %v1359_v8, 0.0  ;;  %v1371_v46 = vrot.slane %v1317_v48, %v3063_v63 }
  0xeb   : > { %v1558_v43 = vadd.f32 %v1557_v39, %v1556_v18  ;;  %v1420_v6 = vsel %vm1400_vm3, %v1363_v59, 0.0  ;;  %v1375_v27 = vrot.slane %v1317_v48, %v3064_v14  ;;  %v1422_v60 = vsel %vm1400_vm3, %v1367_v19, 0.0 }
  0xec   : > { %v1409_v17 = vadd.f32 %v1408_v32, %v1407_v12  ;;  %v1379_v3 = vrot.slane %v1317_v48, %v3065_v2  ;;  %v1424_v33 = vsel %vm1400_vm3, %v1371_v46, 0.0  ;;  %v1383_v50 = vrot.slane %v1317_v48, %v3070_v0 }
  0xed   : > { %1559 = vadd.xlane.f32.xlu1 %v1558_v43  ;;  %v1426_v24 = vsel %vm1400_vm3, %v1375_v27, 0.0 }
  0xee   : > { %v1411_v55 = vadd.f32 %v1410_v34, %v1409_v17  ;;  %v1428_v63 = vsel %vm1400_vm3, %v1379_v3, 0.0  ;;  %v1430_v16 = vsel %vm1400_vm3, %v1383_v50, 0.0 }
  0xf0   : > { %v1413_v51 = vadd.f32 %v1412_v9, %v1411_v55 }
  0xf2   : > { %v1415_v41 = vadd.f32 %v1414_v62, %v1413_v51 }
  0xf4   : > { %v1417_v42 = vadd.f32 %v1416_v57, %v1415_v41 }
  0xf6   : > { %v1419_v26 = vadd.f32 %v1418_v49, %v1417_v42 }
  0xf8   : > { %v1421_v13 = vadd.f32 %v1420_v6, %v1419_v26 }
  0xfa   : > { %v1423_v52 = vadd.f32 %v1422_v60, %v1421_v13 }
  0xfc   : > { %v1425_v54 = vadd.f32 %v1424_v33, %v1423_v52 }
  0xfe   : > { %v1427_v53 = vadd.f32 %v1426_v24, %v1425_v54 }
 0x100   : > { %v1429_v58 = vadd.f32 %v1428_v63, %v1427_v53 }
 0x102   : > { %v1431_v36 = vadd.f32 %v1430_v16, %v1429_v58 }
 0x104   : > { %1432 = vadd.xlane.f32.xlu0 %v1431_v36 }
 0x17a   : > { %v1560_v14 = vpop.xlane.xlu1 %1559 }
 0x17b   : > { %v1561_v7 = vrot.slane %v1560_v14, 4 }
 0x17d   : > { %v1562_v25 = vadd.f32 %v1561_v7, %v1560_v14 }
 0x17f   : > { %v1563_v2 = vrot.slane %v1562_v25, 2 }
 0x181   : > { %v1564_v44 = vadd.f32 %v1563_v2, %v1562_v25 }
 0x183   : > { %v1565_v61 = vrot.slane %v1564_v44, 1 }
 0x185   : > { %v1566_v30 = vadd.f32 %v1565_v61, %v1564_v44 }
 0x191   : > { %v1433_v11 = vpop.xlane.xlu0 %1432 }
 0x192   : > { %v1434_v22 = vrot.slane %v1433_v11, 4 }
 0x194   : > { %v1435_v5 = vadd.f32 %v1434_v22, %v1433_v11 }
 0x196   : > { %v1436_v35 = vrot.slane %v1435_v5, 2 }
 0x198   : > { %v1437_v0 = vadd.f32 %v1436_v35, %v1435_v5 }
 0x19a   : > { %v1438_v38 = vrot.slane %v1437_v0, 1 }
 0x19c   : > { %v1439_v40 = vadd.f32 %v1438_v38, %v1437_v0 }
 0x19e   : > { %1704 = vpush %v1439_v40 }
 0x19f   : > { %1706 = vpush %v1566_v30 }
 0x1cf   : > { %s1705_s12 = spop %1704 }
 0x1d0   : > { %v1441_v31 = vstv %s1705_s12  ;;  %s1707_s15 = spop %1706 }
 0x1d1   : > { %v1442_v28 = vadd.f32 %v1441_v31, %v1199_v20  ;;  %v1568_v56 = vstv %s1707_s15 }
 0x1d2   : > { %v1569_v23 = vadd.f32 %v1568_v56, %v1445_v1 }
 0x1d3   : > { %1444 = vst.msk [vmem:[#allocation2] sm:$0x1] %vm1443_vm5, %v1442_v28 }
 0x1d4   : > { %1570 = vst.msk [vmem:[#allocation4] sm:$0x1] %vm1443_vm5, %v1569_v23 }
 0x1d5   : > { %1838 = shalt.err (!%p1835_p1)
}
 0x1d6   : > { %s1839_s26 = scalar_lea.hbm %s2899_s3, 16 }
 0x1d7   : > { %p1840_p2 = scmp.ne.s32.totalorder %s2899_s3, %s1839_s26  ;;  %p1845_p5 = scmp.lt.u32.totalorder %s1839_s26, %s2899_s3 }
 0x1d9   : > { %p1841_p3 = pnand %p1840_p2, %p2825_p8 }
 0x1db   : > { %p1842_p4 = pneg %p1841_p3 }
 0x1dd   : > { %p1847_p6 = pnand %p1845_p5, %p1842_p4 }
 0x1df   : > { %1850 = shalt.err (!%p1847_p6)
}
 0x1e0   : > { %1709 = dma.vmem_to_hbm [thread:$0]  (%p2825_p8), %s1579_s11, 16, %s2899_s3, [#allocation3]  }
 0x1e1   : > { %s1851_s7 = scalar_lea.vmem %s2829_s14, 16  ;;  %s1857_s8 = scalar_lea.vmem %s2829_s14, 32 }
 0x1e2   : > { %p1852_p7 = scmp.ne.s32.totalorder %s2829_s14, %s1851_s7  ;;  %p1858_p11 = scmp.lt.s32.totalorder %s2829_s14, %s2829_s14 }
 0x1e3   : > { %p1859_p12 = scmp.lt.s32.totalorder %s1857_s8, %s1851_s7 }
 0x1e4   : > { %p1853_p9 = pnand %p1852_p7, %p2825_p8 }
 0x1e5   : > { %p1860_p13 = por %p1859_p12, %p1858_p11 }
 0x1e6   : > { %p1854_p10 = pneg %p1853_p9 }
 0x1e8   : > { %p1861_p0 = pnand %p1860_p13, %p1854_p10 }
 0x1ea   : > { %1864 = shalt.err (!%p1861_p0)
}
 0x1eb   : > { %s1865_s12 = scalar_lea.hbm %s2900_s4, 16 }
 0x1ec   : > { %p1866_p1 = scmp.ne.s32.totalorder %s2900_s4, %s1865_s12  ;;  %p1871_p4 = scmp.lt.u32.totalorder %s1865_s12, %s2900_s4 }
 0x1ee   : > { %p1867_p2 = pnand %p1866_p1, %p2825_p8 }
 0x1f0   : > { %p1868_p3 = pneg %p1867_p2 }
 0x1f2   : > { %p1873_p5 = pnand %p1871_p4, %p1868_p3 }
 0x1f4   : > { %1876 = shalt.err (!%p1873_p5)
}
 0x1f5   : > { %1711 = dma.vmem_to_hbm [thread:$0]  (%p2825_p8), %s2829_s14, 16, %s2900_s4, [#allocation5]  }
 0x1f6   : > { %1898 = dma.done.wait (%p2825_p8), [#allocation3], 16  }
 0x1f7   : > { %1900 = vsyncadd (%p2825_p8), [#allocation3], 4294967280 }
 0x1f8   : > { %1902 = dma.done.wait (%p2825_p8), [#allocation5], 16  }
 0x1f9   : > { %1904 = vsyncadd (%p2825_p8), [#allocation5], 4294967280 }
 0x1fa PF: > { %s17_s19 = sadd.s32 1, %s1923_s19   ;;  %s3080_s15 = smov %s1915_s17 }
 0x1fb   : > { %p14_p6 = scmp.ge.s32.totalorder %s17_s19, 6   ;;  %s3081_s16 = smov %s1919_s18 }
 0x1fc   : > { %s3082_s17 = smov %s3085_s21  ;;  %s3083_s18 = smov %s3089_s22 }
 0x1fd   :  { %16 = sbr.rel (!%p14_p6) target bundleno = 4 (0x4), region = 74 }
 0x204   :  { %1606 = vsyncpa [#allocation3], 1 }
 0x205   :  { %1608 = vsyncpa [#allocation3 + $0x1], 1 }
 0x206   :  { %1609 = vsyncpa [#allocation5], 1 }

</bundles_post_ra>
